<compile_context>
chip_gen: v5e
topology: v5e:2x2
jax: 0.10.0
libtpu: 0.0.40
codegen_flags: <defaults>
</compile_context>

<pallas_src>
import functools

import jax
import jax.numpy as jnp
from jax.experimental import pallas as pl
from jax.experimental.pallas import tpu as pltpu

NORM_CLAMP = 2.0 ** (-12)


def _round_up(x, m):
    return -(-x // m) * m


def _round_down(x, m):
    return (x // m) * m


def _trip_norm_kernel(ms, chans, offs, nonlinearity, w_ref, x_ref, o_ref):
    """One grid step over a (TN, L) lane-dense slab holding all degrees.

    x_ref / o_ref : (TN, L), L = sum_d (2d+1)*C; degree d occupies lanes
                    [offs[d], offs[d] + ms[d]*C).
    w_ref         : (D, C) group-norm weight (ones after reset_parameters).
    """
    C = chans
    w = w_ref[...].astype(jnp.float32)                         # (D, C), tiny
    for d, (M, off) in enumerate(zip(ms, offs)):
        # Load the M_d degree components once (f32); reuse for norm and rescale.
        xs = [x_ref[:, pl.ds(off + m * C, C)].astype(jnp.float32) for m in range(M)]
        if M == 1:
            n = jnp.abs(xs[0])                                 # (TN, C)
        else:
            nsq = xs[0] * xs[0]
            for m in range(1, M):
                nsq = nsq + xs[m] * xs[m]
            n = jnp.sqrt(nsq)                                  # (TN, C)
        n = jnp.maximum(n, NORM_CLAMP)
        # TrIPGroupNorm: divide by the per-(node, degree) channel mean.
        inv_mean = 1.0 / jnp.mean(n, axis=-1, keepdims=True)   # (TN, 1)
        w_row = w[d:d + 1, :]                                  # (1, C)
        if nonlinearity is None:
            # Identity nonlinearity (module default): (n/mean*w)/n == w/mean.
            factor = w_row * inv_mean                          # (TN, C)
        else:
            factor = nonlinearity(n * inv_mean * w_row) / n    # (TN, C)
        # Rescale in f32 and store per component with static lane-slice stores
        # (no jnp.concatenate -> no cross-lane relayout temporaries).
        for m in range(M):
            o_ref[:, pl.ds(off + m * C, C)] = (xs[m] * factor).astype(o_ref.dtype)


def _choose_tile(N, lanes, itemsize, tn):
    """Node-tile rows: sublane-aligned, VMEM-budgeted, large enough to amortize
    the per-step fixed cost, preferring an even number (>= 4) of grid steps so
    both of v7x's TensorCores stay balanced with pipelined work."""
    sub = {1: 32, 2: 16}.get(itemsize, 8)              # sublane multiple per dtype
    lanes_pad = _round_up(lanes, 128)
    # Double-buffered in+out tiles plus ~3 lane-padded f32 rows of in-kernel
    # temporaries (component slices, squared sums, factor).
    per_row_bytes = 2 * 2 * lanes_pad * itemsize + 3 * lanes_pad * 4
    budget = 20 * 1024 * 1024                          # conservative for v7x VMEM
    if tn is None:
        tn = 1024                                      # big steps amortize ~0.35us/step
    tn = min(tn, _round_up(N, sub))
    tn = max(_round_down(tn, sub), sub)
    while tn > sub and tn * per_row_bytes > budget:
        tn = max(_round_down(tn // 2, sub), sub)
    steps = -(-N // tn)
    if steps < 4 and N > 4 * sub:
        tn = max(_round_up(-(-N // 4), sub), sub)
        steps = -(-N // tn)
    if steps > 1 and steps % 2 == 1:
        tn_even = max(_round_up(-(-N // (steps + 1)), sub), sub)
        if (-(-N // tn_even)) % 2 == 0:
            tn = tn_even
    return tn


def trip_norm_slab_pallas(slab, ms, chans, weight_dc, *, tn=None, nonlinearity=None):
    """Group-norm TrIPNorm on a lane-dense slab.

    slab      : (N, L) -- degree d's (2d+1, C) block flattened row-major and the
                degrees concatenated along lanes, L = sum_d (2d+1)*C.
    ms        : tuple of (2d+1) per degree.
    chans     : C (equal for all degrees -> group-norm path).
    weight_dc : (D, C) group-norm weight (transpose of the torch (C, D) param).
    nonlinearity=None means the module's default identity nonlinearity (folded
    algebraically in-kernel); otherwise pass a traceable callable (e.g. relu).
    """
    N, L = slab.shape
    n_deg = len(ms)
    assert L == sum(ms) * chans, (L, ms, chans)
    assert weight_dc.shape == (n_deg, chans)
    offs = tuple(sum(ms[:d]) * chans for d in range(n_deg))
    itemsize = jnp.dtype(slab.dtype).itemsize

    tn = _choose_tile(N, L, itemsize, tn)
    n_pad = _round_up(N, tn)
    padded = n_pad != N
    slab_in = jnp.pad(slab, ((0, n_pad - N), (0, 0))) if padded else slab

    cost = pl.CostEstimate(
        flops=6 * n_pad * L,
        transcendentals=n_pad * (L + n_deg),
        bytes_accessed=int(2 * n_pad * L * itemsize
                           + weight_dc.size * jnp.dtype(weight_dc.dtype).itemsize),
    )
    kernel = functools.partial(_trip_norm_kernel, tuple(ms), chans, offs, nonlinearity)
    out = pl.pallas_call(
        kernel,
        grid=(n_pad // tn,),
        in_specs=[
            pl.BlockSpec((n_deg, chans), lambda i: (0, 0)),    # weight (stays resident)
            pl.BlockSpec((tn, L), lambda i: (i, 0)),           # slab tile
        ],
        out_specs=pl.BlockSpec((tn, L), lambda i: (i, 0)),
        out_shape=jax.ShapeDtypeStruct((n_pad, L), slab.dtype),
        compiler_params=pltpu.CompilerParams(
            dimension_semantics=("parallel",),
            vmem_limit_bytes=32 * 1024 * 1024,
        ),
        cost_estimate=cost,
    )(weight_dc, slab_in)
    return out[:N] if padded else out


def trip_norm_pallas(features, weight_dc, *, tn=None, nonlinearity=None):
    """Convenience wrapper: list over degrees d=0..D-1 of (N, 2d+1, C) arrays.

    # TODO(synk): in production the producer should emit (and the consumer accept)
    # the concatenated (N, sum(2d+1)*C) slab directly so this wrapper's XLA
    # concatenate/split passes disappear; the Pallas kernel already works on the slab.
    """
    N, _, C = features[0].shape
    assert all(f.shape[0] == N and f.shape[2] == C for f in features)
    ms = tuple(int(f.shape[1]) for f in features)
    slab = jnp.concatenate([f.reshape(N, m * C) for f, m in zip(features, ms)], axis=-1)
    out = trip_norm_slab_pallas(slab, ms, C, weight_dc, tn=tn, nonlinearity=nonlinearity)
    res, off = [], 0
    for m in ms:
        res.append(out[:, off:off + m * C].reshape(N, m, C))
        off += m * C
    return res


def trip_norm_ref(features, weight_dc, nonlinearity=None):
    """Pure-JAX reference mirroring the PyTorch forward (in kernel layout)."""
    nl = (lambda x: x) if nonlinearity is None else nonlinearity
    norms = [jnp.maximum(jnp.sqrt(jnp.sum(f.astype(jnp.float32) ** 2, axis=1)), NORM_CLAMP)
             for f in features]                               # (N, C) per degree
    fused = jnp.stack(norms, axis=-1)                         # (N, C, D)
    mean = jnp.mean(fused, axis=-2, keepdims=True)            # (N, 1, D)
    new = nl(fused / mean * weight_dc.T[None, :, :])          # torch weight is (C, D)
    factor = new / fused                                      # (N, C, D)
    return [(f.astype(jnp.float32) * factor[..., d][:, None, :]).astype(f.dtype)
            for d, f in enumerate(features)]


if __name__ == "__main__":
    key = jax.random.PRNGKey(0)
    N, C = 256, 32         # nodes, channels per degree (small demo shape)
    degrees = (0, 1, 2)    # fiber with equal channel counts -> group-norm path

    feats = []
    for d in degrees:
        key, sub = jax.random.split(key)
        feats.append(jax.random.normal(sub, (N, 2 * d + 1, C), dtype=jnp.float32))
    # Exercise the NORM_CLAMP path: zero a few nodes of degree 0.
    feats[0] = feats[0].at[:4].set(0.0)

    # Module default: group-norm weight initialised to ones. Also a trained-like
    # weight. Kernel consumes (D, C) = transpose of the torch (C, D) parameter.
    key, sub = jax.random.split(key)
    weights = [
        jnp.ones((len(degrees), C), dtype=jnp.float32),
        0.5 + jax.random.uniform(sub, (len(degrees), C), dtype=jnp.float32),
    ]

    for w_dc in weights:
        outs = [jax.block_until_ready(o) for o in trip_norm_pallas(feats, w_dc)]
        refs = trip_norm_ref(feats, w_dc)
        for o, r in zip(outs, refs):
            assert o.shape == r.shape and o.dtype == r.dtype
            err = float(jnp.max(jnp.abs(o - r)))
            assert jnp.allclose(o, r, rtol=1e-5, atol=1e-5), err

    # General (non-identity) nonlinearity path: ReLU with a signed weight.
    key, sub = jax.random.split(key)
    w_signed = jax.random.normal(sub, (len(degrees), C), dtype=jnp.float32)
    outs = [jax.block_until_ready(o)
            for o in trip_norm_pallas(feats, w_signed, nonlinearity=jax.nn.relu)]
    refs = trip_norm_ref(feats, w_signed, nonlinearity=jax.nn.relu)
    for o, r in zip(outs, refs):
        err = float(jnp.max(jnp.abs(o - r)))
        assert jnp.allclose(o, r, rtol=1e-5, atol=1e-5), err

    # Ragged N (exercises the sublane-aligned padding path) + bf16 inputs.
    N2 = 100
    feats2 = [f[:N2].astype(jnp.bfloat16) for f in feats]
    outs2 = [jax.block_until_ready(o) for o in trip_norm_pallas(feats2, weights[1])]
    refs2 = trip_norm_ref(feats2, weights[1])
    for o, r in zip(outs2, refs2):
        assert o.shape == r.shape and o.dtype == r.dtype
        diff = float(jnp.max(jnp.abs(o.astype(jnp.float32) - r.astype(jnp.float32))))
        assert diff < 5e-2, diff

    print("KERNEL_OK")
</pallas_src>

<mosaic_0001>
module attributes {stable_mosaic.version = 11 : i64} {
  func.func @_trip_norm_kernel(%arg0: i32, %arg1: memref<3x32xf32, #tpu.memory_space<vmem>>, %arg2: memref<64x288xf32, #tpu.memory_space<vmem>>, %arg3: memref<64x288xf32, #tpu.memory_space<vmem>>) attributes {dimension_semantics = [#tpu.dimension_semantics<parallel>], iteration_bounds = array<i64: 4>, scalar_prefetch = 0 : i64, scratch_operands = 0 : i64, tpu.core_type = #tpu.core_type<tc>, window_params = [{pipeline_mode = #tpu.pipeline_mode<synchronous>, transform_indices = @transform_0, window_bounds = array<i64: 3, 32>}, {transform_indices = @transform_1, window_bounds = array<i64: 64, 288>}, {transform_indices = @transform_2, window_bounds = array<i64: 64, 288>}]} {
    %c0 = arith.constant 0 : index
    %c0_0 = arith.constant 0 : index
    %0 = vector.load %arg1[%c0, %c0_0] : memref<3x32xf32, #tpu.memory_space<vmem>>, vector<3x32xf32>
    %c0_1 = arith.constant 0 : index
    %c0_2 = arith.constant 0 : index
    %1 = vector.load %arg2[%c0_1, %c0_2] : memref<64x288xf32, #tpu.memory_space<vmem>>, vector<64x32xf32>
    %2 = math.absf %1 : vector<64x32xf32>
    %cst = arith.constant 2.44140625E-4 : f32
    %3 = vector.broadcast %cst : f32 to vector<64x32xf32>
    %4 = arith.maximumf %2, %3 : vector<64x32xf32>
    %cst_3 = arith.constant dense<0.000000e+00> : vector<64xf32>
    %5 = vector.multi_reduction <add>, %4, %cst_3 [1] : vector<64x32xf32> to vector<64xf32>
    %6 = vector.shape_cast %5 : vector<64xf32> to vector<64x1xf32>
    %cst_4 = arith.constant 3.200000e+01 : f32
    %7 = vector.broadcast %cst_4 : f32 to vector<64x1xf32>
    %8 = arith.divf %6, %7 : vector<64x1xf32>
    %cst_5 = arith.constant 1.000000e+00 : f32
    %9 = vector.broadcast %cst_5 : f32 to vector<64x1xf32>
    %10 = arith.divf %9, %8 : vector<64x1xf32>
    %11 = vector.extract_strided_slice %0 {offsets = [0, 0], sizes = [1, 32], strides = [1, 1]} : vector<3x32xf32> to vector<1x32xf32>
    %12 = vector.broadcast %11 : vector<1x32xf32> to vector<64x32xf32>
    %13 = vector.broadcast %10 : vector<64x1xf32> to vector<64x32xf32>
    %14 = arith.mulf %12, %13 : vector<64x32xf32>
    %15 = arith.mulf %1, %14 : vector<64x32xf32>
    %c0_6 = arith.constant 0 : index
    %c0_7 = arith.constant 0 : index
    %16 = vector.load %arg3[%c0_6, %c0_7] : memref<64x288xf32, #tpu.memory_space<vmem>>, vector<64x32xf32>
    tpu.vector_store %arg3[%c0_6, %c0_7], %15 {strides = array<i32>} : memref<64x288xf32, #tpu.memory_space<vmem>>, vector<64x32xf32>,
    %c0_8 = arith.constant 0 : index
    %c32 = arith.constant 32 : index
    %17 = vector.load %arg2[%c0_8, %c32] : memref<64x288xf32, #tpu.memory_space<vmem>>, vector<64x32xf32>
    %c0_9 = arith.constant 0 : index
    %c64 = arith.constant 64 : index
    %18 = vector.load %arg2[%c0_9, %c64] : memref<64x288xf32, #tpu.memory_space<vmem>>, vector<64x32xf32>
    %c0_10 = arith.constant 0 : index
    %c96 = arith.constant 96 : index
    %19 = vector.load %arg2[%c0_10, %c96] : memref<64x288xf32, #tpu.memory_space<vmem>>, vector<64x32xf32>
    %20 = arith.mulf %17, %17 : vector<64x32xf32>
    %21 = arith.mulf %18, %18 : vector<64x32xf32>
    %22 = arith.addf %20, %21 : vector<64x32xf32>
    %23 = arith.mulf %19, %19 : vector<64x32xf32>
    %24 = arith.addf %22, %23 : vector<64x32xf32>
    %25 = math.sqrt %24 : vector<64x32xf32>
    %cst_11 = arith.constant 2.44140625E-4 : f32
    %26 = vector.broadcast %cst_11 : f32 to vector<64x32xf32>
    %27 = arith.maximumf %25, %26 : vector<64x32xf32>
    %cst_12 = arith.constant dense<0.000000e+00> : vector<64xf32>
    %28 = vector.multi_reduction <add>, %27, %cst_12 [1] : vector<64x32xf32> to vector<64xf32>
    %29 = vector.shape_cast %28 : vector<64xf32> to vector<64x1xf32>
    %cst_13 = arith.constant 3.200000e+01 : f32
    %30 = vector.broadcast %cst_13 : f32 to vector<64x1xf32>
    %31 = arith.divf %29, %30 : vector<64x1xf32>
    %cst_14 = arith.constant 1.000000e+00 : f32
    %32 = vector.broadcast %cst_14 : f32 to vector<64x1xf32>
    %33 = arith.divf %32, %31 : vector<64x1xf32>
    %34 = vector.extract_strided_slice %0 {offsets = [1, 0], sizes = [1, 32], strides = [1, 1]} : vector<3x32xf32> to vector<1x32xf32>
    %35 = vector.broadcast %34 : vector<1x32xf32> to vector<64x32xf32>
    %36 = vector.broadcast %33 : vector<64x1xf32> to vector<64x32xf32>
    %37 = arith.mulf %35, %36 : vector<64x32xf32>
    %38 = arith.mulf %17, %37 : vector<64x32xf32>
    %c0_15 = arith.constant 0 : index
    %c32_16 = arith.constant 32 : index
    %39 = vector.load %arg3[%c0_15, %c32_16] : memref<64x288xf32, #tpu.memory_space<vmem>>, vector<64x32xf32>
    tpu.vector_store %arg3[%c0_15, %c32_16], %38 {strides = array<i32>} : memref<64x288xf32, #tpu.memory_space<vmem>>, vector<64x32xf32>,
    %40 = arith.mulf %18, %37 : vector<64x32xf32>
    %c0_17 = arith.constant 0 : index
    %c64_18 = arith.constant 64 : index
    %41 = vector.load %arg3[%c0_17, %c64_18] : memref<64x288xf32, #tpu.memory_space<vmem>>, vector<64x32xf32>
    tpu.vector_store %arg3[%c0_17, %c64_18], %40 {strides = array<i32>} : memref<64x288xf32, #tpu.memory_space<vmem>>, vector<64x32xf32>,
    %42 = arith.mulf %19, %37 : vector<64x32xf32>
    %c0_19 = arith.constant 0 : index
    %c96_20 = arith.constant 96 : index
    %43 = vector.load %arg3[%c0_19, %c96_20] : memref<64x288xf32, #tpu.memory_space<vmem>>, vector<64x32xf32>
    tpu.vector_store %arg3[%c0_19, %c96_20], %42 {strides = array<i32>} : memref<64x288xf32, #tpu.memory_space<vmem>>, vector<64x32xf32>,
    %c0_21 = arith.constant 0 : index
    %c128 = arith.constant 128 : index
    %44 = vector.load %arg2[%c0_21, %c128] : memref<64x288xf32, #tpu.memory_space<vmem>>, vector<64x32xf32>
    %c0_22 = arith.constant 0 : index
    %c160 = arith.constant 160 : index
    %45 = vector.load %arg2[%c0_22, %c160] : memref<64x288xf32, #tpu.memory_space<vmem>>, vector<64x32xf32>
    %c0_23 = arith.constant 0 : index
    %c192 = arith.constant 192 : index
    %46 = vector.load %arg2[%c0_23, %c192] : memref<64x288xf32, #tpu.memory_space<vmem>>, vector<64x32xf32>
    %c0_24 = arith.constant 0 : index
    %c224 = arith.constant 224 : index
    %47 = vector.load %arg2[%c0_24, %c224] : memref<64x288xf32, #tpu.memory_space<vmem>>, vector<64x32xf32>
    %c0_25 = arith.constant 0 : index
    %c256 = arith.constant 256 : index
    %48 = vector.load %arg2[%c0_25, %c256] : memref<64x288xf32, #tpu.memory_space<vmem>>, vector<64x32xf32>
    %49 = arith.mulf %44, %44 : vector<64x32xf32>
    %50 = arith.mulf %45, %45 : vector<64x32xf32>
    %51 = arith.addf %49, %50 : vector<64x32xf32>
    %52 = arith.mulf %46, %46 : vector<64x32xf32>
    %53 = arith.addf %51, %52 : vector<64x32xf32>
    %54 = arith.mulf %47, %47 : vector<64x32xf32>
    %55 = arith.addf %53, %54 : vector<64x32xf32>
    %56 = arith.mulf %48, %48 : vector<64x32xf32>
    %57 = arith.addf %55, %56 : vector<64x32xf32>
    %58 = math.sqrt %57 : vector<64x32xf32>
    %cst_26 = arith.constant 2.44140625E-4 : f32
    %59 = vector.broadcast %cst_26 : f32 to vector<64x32xf32>
    %60 = arith.maximumf %58, %59 : vector<64x32xf32>
    %cst_27 = arith.constant dense<0.000000e+00> : vector<64xf32>
    %61 = vector.multi_reduction <add>, %60, %cst_27 [1] : vector<64x32xf32> to vector<64xf32>
    %62 = vector.shape_cast %61 : vector<64xf32> to vector<64x1xf32>
    %cst_28 = arith.constant 3.200000e+01 : f32
    %63 = vector.broadcast %cst_28 : f32 to vector<64x1xf32>
    %64 = arith.divf %62, %63 : vector<64x1xf32>
    %cst_29 = arith.constant 1.000000e+00 : f32
    %65 = vector.broadcast %cst_29 : f32 to vector<64x1xf32>
    %66 = arith.divf %65, %64 : vector<64x1xf32>
    %67 = vector.extract_strided_slice %0 {offsets = [2, 0], sizes = [1, 32], strides = [1, 1]} : vector<3x32xf32> to vector<1x32xf32>
    %68 = vector.broadcast %67 : vector<1x32xf32> to vector<64x32xf32>
    %69 = vector.broadcast %66 : vector<64x1xf32> to vector<64x32xf32>
    %70 = arith.mulf %68, %69 : vector<64x32xf32>
    %71 = arith.mulf %44, %70 : vector<64x32xf32>
    %c0_30 = arith.constant 0 : index
    %c128_31 = arith.constant 128 : index
    %72 = vector.load %arg3[%c0_30, %c128_31] : memref<64x288xf32, #tpu.memory_space<vmem>>, vector<64x32xf32>
    tpu.vector_store %arg3[%c0_30, %c128_31], %71 {strides = array<i32>} : memref<64x288xf32, #tpu.memory_space<vmem>>, vector<64x32xf32>,
    %73 = arith.mulf %45, %70 : vector<64x32xf32>
    %c0_32 = arith.constant 0 : index
    %c160_33 = arith.constant 160 : index
    %74 = vector.load %arg3[%c0_32, %c160_33] : memref<64x288xf32, #tpu.memory_space<vmem>>, vector<64x32xf32>
    tpu.vector_store %arg3[%c0_32, %c160_33], %73 {strides = array<i32>} : memref<64x288xf32, #tpu.memory_space<vmem>>, vector<64x32xf32>,
    %75 = arith.mulf %46, %70 : vector<64x32xf32>
    %c0_34 = arith.constant 0 : index
    %c192_35 = arith.constant 192 : index
    %76 = vector.load %arg3[%c0_34, %c192_35] : memref<64x288xf32, #tpu.memory_space<vmem>>, vector<64x32xf32>
    tpu.vector_store %arg3[%c0_34, %c192_35], %75 {strides = array<i32>} : memref<64x288xf32, #tpu.memory_space<vmem>>, vector<64x32xf32>,
    %77 = arith.mulf %47, %70 : vector<64x32xf32>
    %c0_36 = arith.constant 0 : index
    %c224_37 = arith.constant 224 : index
    %78 = vector.load %arg3[%c0_36, %c224_37] : memref<64x288xf32, #tpu.memory_space<vmem>>, vector<64x32xf32>
    tpu.vector_store %arg3[%c0_36, %c224_37], %77 {strides = array<i32>} : memref<64x288xf32, #tpu.memory_space<vmem>>, vector<64x32xf32>,
    %79 = arith.mulf %48, %70 : vector<64x32xf32>
    %c0_38 = arith.constant 0 : index
    %c256_39 = arith.constant 256 : index
    %80 = vector.load %arg3[%c0_38, %c256_39] : memref<64x288xf32, #tpu.memory_space<vmem>>, vector<64x32xf32>
    tpu.vector_store %arg3[%c0_38, %c256_39], %79 {strides = array<i32>} : memref<64x288xf32, #tpu.memory_space<vmem>>, vector<64x32xf32>,
    return
  }
  func.func @transform_0(%arg0: i32) -> (i32, i32) {
    %c0_i32 = arith.constant 0 : i32
    %c0_i32_0 = arith.constant 0 : i32
    %c0_i32_1 = arith.constant 0 : i32
    return %c0_i32, %c0_i32_0 : i32, i32
  }
  func.func @transform_1(%arg0: i32) -> (i32, i32) {
    %c0_i32 = arith.constant 0 : i32
    %c0_i32_0 = arith.constant 0 : i32
    return %arg0, %c0_i32 : i32, i32
  }
  func.func @transform_2(%arg0: i32) -> (i32, i32) {
    %c0_i32 = arith.constant 0 : i32
    %c0_i32_0 = arith.constant 0 : i32
    return %arg0, %c0_i32 : i32, i32
  }
}

</mosaic_0001>

<bundles_post_ra>
// kernel: tpu_custom_call.1
= control target key start
LH: loop header
LB: loop body
LE: loop exit
PB: predicated region body
PF: predicated region fallthrough
CT: control target
= control target key end

     0   :  { %s1655_s9 = smov 0   ;;  %s2790_s0 = inlined_call_operand.vmem [shape: f32[3,32], index: 0, kind: input, shape index: {}]   ;;  %s2791_s1 = inlined_call_operand.vmem [shape: f32[256,288], index: 1, kind: input, shape index: {}]   ;;  %s2792_s2 = inlined_call_operand.vmem [shape: f32[256,288], index: 2, kind: output, shape index: {}]  }
   0x1 LB: > { %s1505_s10 = sadd.s32 4294967295, %s1634_s9   ;;  %p1509_p0 = scmp.ge.s32.totalorder %s1634_s9, 1  ;;  %s1634_s9 = sphi %s1655_s9, %s12_s9  }
   0x2   : > { %p114_p1 = scmp.lt.s32.totalorder %s1634_s9, 5 }
   0x4   : > { %p115_p2 = pnand %p1509_p0, %p114_p1 }
   0x5   : > { %s1510_s11 = sshll.u32 (!%p115_p2), %s1505_s10, 3  ;;  %s1636_s16 = smov (!%p115_p2), 96  }
   0x6   : > { %118 = sbr.rel (%p115_p2) target bundleno = 741 (0x2e5), region = 28  ;;  %p139_p3 = scmp.lt.s32.totalorder (!%p115_p2), %s1510_s11, 31 }
   0x7   : > { %s1637_s17 = smov (!%p115_p2), 64   ;;  %s1639_s18 = smov (!%p115_p2), 32  }
   0xb   : > { %s2828_s11 = smov (!%p139_p3, %s1510_s11), 31  ;;  %vm177_vm0 = vcmask 261120   ;;  %v1638_v53 = vmov 32.0  }
   0xc   : > { %s1516_s12 = smul.u32 24, %s2828_s11  ;;  %1529 = vrcp.f32 %v1638_v53 }
   0xe   : > { %s1671_s15 = scalar_lea.vmem %s2791_s1, %s1516_s12  ;;  %s1929_s23 = scalar_lea.vmem %s2792_s2, %s1516_s12 }
   0xf   : > { %v1674_v0 = vld [vmem:[%s1671_s15 + $0x60] sm:$0xff]  ;;  %v1677_v1 = vld [vmem:[%s1671_s15 + $0x30] sm:$0xff]  ;;  %v1686_v6 = vld [vmem:[%s1671_s15 + $0x78] sm:$0xff] }
  0x10   : > { %v1680_v2 = vld [vmem:[%s1671_s15] sm:$0xff]  ;;  %v165_v3 = vand.u32 2147483647, %v1674_v0  ;;  %v163_v4 = vand.u32 2147483647, %v1677_v1  ;;  %v1689_v7 = vld [vmem:[%s1671_s15 + $0x48] sm:$0xff]  ;;  %v1731_v35 = vmul.f32 %v1677_v1, %v1677_v1  ;;  %v1739_v36 = vmul.f32 %v1674_v0, %v1674_v0 }
  0x11   : > { %v161_v5 = vand.u32 2147483647, %v1680_v2  ;;  %v1692_v8 = vld [vmem:[%s1671_s15 + $0x18] sm:$0xff]  ;;  %v166_v12 = vand.u32 2147483647, %v1686_v6  ;;  %v1701_v21 = vld [vmem:[%s1671_s15 + $0xa8] sm:$0xff]  ;;  %v1715_v32 = vmul.f32 %v1680_v2, %v1680_v2  ;;  %v1725_v34 = vmul.f32 %v1689_v7, %v1689_v7 }
  0x12   : > { %v173_v9 = vmax.f32 %v165_v3, 0.00024414063  ;;  %v171_v10 = vmax.f32 %v163_v4, 0.00024414063  ;;  %v164_v13 = vand.u32 2147483647, %v1689_v7  ;;  %v162_v14 = vand.u32 2147483647, %v1692_v8  ;;  %v1530_v57 = vpop.eup %1529 }
  0x13   : > { %v169_v11 = vmax.f32 %v161_v5, 0.00024414063  ;;  %v174_v18 = vmax.f32 %v166_v12, 0.00024414063  ;;  %v1704_v22 = vld [vmem:[%s1671_s15 + $0x90] sm:$0xff]  ;;  %v168_v25 = vand.u32 2147483647, %v1701_v21  ;;  %v1721_v33 = vmul.f32 %v1692_v8, %v1692_v8  ;;  %v879_v40 = vld [vmem:[%s1671_s15 + $0x20] sm:$0xff] }
  0x14   : > { %v190_v15 = vsel %vm177_vm0, %v173_v9, 0.0  ;;  %v184_v16 = vsel %vm177_vm0, %v171_v10, 0.0  ;;  %v172_v19 = vmax.f32 %v164_v13, 0.00024414063  ;;  %v170_v20 = vmax.f32 %v162_v14, 0.00024414063  ;;  %v878_v42 = vld [vmem:[%s1671_s15 + $0x8] sm:$0xff]  ;;  %v880_v43 = vld [vmem:[%s1671_s15 + $0x38] sm:$0xff] }
  0x15   : > { %v178_v17 = vsel %vm177_vm0, %v169_v11, 0.0  ;;  %191 = vadd.xlane.f32.xlu2 %v190_v15  ;;  %185 = vadd.xlane.f32.xlu1 %v184_v16  ;;  %v193_v23 = vsel %vm177_vm0, %v174_v18, 0.0  ;;  %v167_v27 = vand.u32 2147483647, %v1704_v22  ;;  %v176_v28 = vmax.f32 %v168_v25, 0.00024414063  ;;  %v882_v46 = vld [vmem:[%s1671_s15 + $0x68] sm:$0xff] }
  0x16   : > { %179 = vadd.xlane.f32.xlu0 %v178_v17  ;;  %v187_v24 = vsel %vm177_vm0, %v172_v19, 0.0  ;;  %v181_v26 = vsel %vm177_vm0, %v170_v20, 0.0  ;;  %v1743_v37 = vmul.f32 %v1686_v6, %v1686_v6  ;;  %v1749_v38 = vmul.f32 %v1704_v22, %v1704_v22  ;;  %v881_v48 = vld [vmem:[%s1671_s15 + $0x50] sm:$0xff]  ;;  %v883_v49 = vld [vmem:[%s1671_s15 + $0x80] sm:$0xff]  ;;  %v884_v55 = vld [vmem:[%s1671_s15 + $0x98] sm:$0xff] }
  0x17   : > { %v175_v29 = vmax.f32 %v167_v27, 0.00024414063  ;;  %v199_v30 = vsel %vm177_vm0, %v176_v28, 0.0  ;;  %v1757_v39 = vmul.f32 %v1701_v21, %v1701_v21  ;;  %v1778_v41 = vmul.f32 %v879_v40, %v879_v40  ;;  %v885_v52 = vld [vmem:[%s1671_s15 + $0xb0] sm:$0xff]  ;;  %v152_v11 = vld [vmem:[%s2790_s0] sm:$0x7] }
  0x18   : > { %v1782_v44 = vmul.f32 %v878_v42, %v878_v42  ;;  %v1784_v45 = vmul.f32 %v880_v43, %v880_v43  ;;  %v1793_v47 = vmul.f32 %v882_v46, %v882_v46  ;;  %v1797_v50 = vmul.f32 %v881_v48, %v881_v48 }
  0x19   : > { %v196_v31 = vsel %vm177_vm0, %v175_v29, 0.0  ;;  %v1799_v51 = vmul.f32 %v883_v49, %v883_v49  ;;  %v1808_v54 = vmul.f32 %v885_v52, %v885_v52  ;;  %v1811_v56 = vmul.f32 %v884_v55, %v884_v55 }
  0x1a   : > { %v203_v58 = vmul.f32 32.0, %v1530_v57  ;;  %vm207_vm1 = vweird.f32 %v1530_v57  ;;  %v1845_v13 = vperm.slane %v152_v11, 0 }
  0x1c   : > { %v204_v59 = vsub.f32 1.0, %v203_v58 }
  0x1d   : > { %194 = vadd.xlane.f32.xlu2 %v193_v23  ;;  %188 = vadd.xlane.f32.xlu1 %v187_v24 }
  0x1e   : > { %182 = vadd.xlane.f32.xlu0 %v181_v26  ;;  %v205_v60 = vmul.f32 %v1530_v57, %v204_v59 }
  0x20   : > { %v206_v61 = vadd.f32 %v1530_v57, %v205_v60 }
  0x22   : > { %v1831_v62 = vsel %vm207_vm1, %v1530_v57, %v206_v61 }
  0x25   : > { %200 = vadd.xlane.f32.xlu1 %v199_v30 }
  0x26   : > { %197 = vadd.xlane.f32.xlu0 %v196_v31 }
  0x35   : > { %386 = vrot.lane.b32.xlu2 %v1715_v32, %s1636_s16 }
  0x3a   : > { %388 = vrot.lane.b32.xlu0 %v1721_v33, %s1636_s16 }
  0x3d   : > { %392 = vrot.lane.b32.xlu2 %v1725_v34, %s1636_s16 }
  0x3e   : > { %390 = vrot.lane.b32.xlu1 %v1731_v35, %s1636_s16 }
  0x42   : > { %394 = vrot.lane.b32.xlu0 %v1739_v36, %s1636_s16 }
  0x45   : > { %396 = vrot.lane.b32.xlu2 %v1743_v37, %s1636_s16 }
  0x46   : > { %398 = vrot.lane.b32.xlu1 %v1749_v38, %s1636_s16 }
  0x4a   : > { %400 = vrot.lane.b32.xlu0 %v1757_v39, %s1636_s16 }
  0x4d   : > { %418 = vrot.lane.b32.xlu2 %v1715_v32, %s1637_s17 }
  0x4e   : > { %420 = vrot.lane.b32.xlu1 %v1721_v33, %s1637_s17 }
  0x52   : > { %422 = vrot.lane.b32.xlu0 %v1731_v35, %s1637_s17 }
  0x55   : > { %424 = vrot.lane.b32.xlu2 %v1725_v34, %s1637_s17 }
  0x56   : > { %426 = vrot.lane.b32.xlu1 %v1739_v36, %s1637_s17 }
  0x5a   : > { %428 = vrot.lane.b32.xlu0 %v1743_v37, %s1637_s17 }
  0x5d   : > { %430 = vrot.lane.b32.xlu2 %v1749_v38, %s1637_s17 }
  0x5e   : > { %432 = vrot.lane.b32.xlu1 %v1757_v39, %s1637_s17 }
  0x62   : > { %912 = vrot.lane.b32.xlu0 %v1778_v41, %s1636_s16 }
  0x65   : > { %910 = vrot.lane.b32.xlu2 %v1782_v44, %s1636_s16 }
  0x66   : > { %914 = vrot.lane.b32.xlu1 %v1784_v45, %s1636_s16 }
  0x6a   : > { %918 = vrot.lane.b32.xlu0 %v1793_v47, %s1636_s16 }
  0x6d   : > { %916 = vrot.lane.b32.xlu2 %v1797_v50, %s1636_s16 }
  0x6e   : > { %920 = vrot.lane.b32.xlu1 %v1799_v51, %s1636_s16 }
  0x72   : > { %924 = vrot.lane.b32.xlu0 %v1808_v54, %s1636_s16 }
  0x75   : > { %922 = vrot.lane.b32.xlu2 %v1811_v56, %s1636_s16 }
  0x76   : > { %942 = vrot.lane.b32.xlu1 %v1782_v44, %s1637_s17 }
  0x7a   : > { %946 = vrot.lane.b32.xlu0 %v1784_v45, %s1637_s17 }
  0x7d   : > { %944 = vrot.lane.b32.xlu2 %v1778_v41, %s1637_s17 }
  0x7e   : > { %948 = vrot.lane.b32.xlu1 %v1797_v50, %s1637_s17 }
  0x82   : > { %952 = vrot.lane.b32.xlu0 %v1799_v51, %s1637_s17 }
  0x85   : > { %950 = vrot.lane.b32.xlu2 %v1793_v47, %s1637_s17 }
  0x86   : > { %954 = vrot.lane.b32.xlu1 %v1811_v56, %s1637_s17 }
  0x88   : > { %v192_v63 = vpop.xlane.xlu2 %191  ;;  %v186_v3 = vpop.xlane.xlu1 %185 }
  0x89   : > { %v213_v4 = vmul.f32 %v1831_v62, %v192_v63  ;;  %v180_v5 = vpop.xlane.xlu0 %179  ;;  %v211_v9 = vmul.f32 %v1831_v62, %v186_v3 }
  0x8a   : > { %v209_v10 = vmul.f32 %v1831_v62, %v180_v5  ;;  %974 = vrot.lane.b32.xlu0 %v1782_v44, %s1639_s18 }
  0x8b   : > { %1531 = vrcp.f32 %v213_v4  ;;  %v288_v12 = vand.u32 2147483648, %v213_v4  ;;  %vm282_vm2 = vweird.f32 %v213_v4  ;;  %v286_v17 = vand.u32 2147483647, %v213_v4 }
  0x8c   : > { %1533 = vrcp.f32 %v209_v10  ;;  %vm222_vm3 = vweird.f32 %v209_v10  ;;  %v226_v18 = vand.u32 2147483647, %v209_v10  ;;  %v228_v26 = vand.u32 2147483648, %v209_v10 }
  0x8d   : > { %1535 = vrcp.f32 %v211_v9  ;;  %956 = vrot.lane.b32.xlu2 %v1808_v54, %s1637_s17  ;;  %v289_v25 = vor.u32 1.1754944e-38, %v288_v12  ;;  %vm252_vm4 = vweird.f32 %v211_v9  ;;  %v256_v42 = vand.u32 2147483647, %v211_v9 }
  0x8e   : > { %976 = vrot.lane.b32.xlu1 %v1778_v41, %s1639_s18  ;;  %v258_v43 = vand.u32 2147483648, %v211_v9  ;;  %vm1863_vm6 = vcmp.eq.f32.partialorder %v286_v17, 8.507059e+37  ;;  %vm1867_vm7 = vcmp.eq.f32.partialorder %v226_v18, 8.507059e+37  ;;  %v229_v58 = vor.u32 1.1754944e-38, %v228_v26 }
  0x8f   : > { %vm1887_vm11 = vcmp.eq.f32.partialorder %v256_v42, 8.507059e+37 }
  0x90   : > { %v195_v14 = vpop.xlane.xlu2 %194  ;;  %v189_v15 = vpop.xlane.xlu1 %188  ;;  %v259_v3 = vor.u32 1.1754944e-38, %v258_v43 }
  0x91   : > { %v1847_v16 = vpop.eup %1531  ;;  %v1850_v19 = vmul.f32 %v1831_v62, %v195_v14  ;;  %v183_v20 = vpop.xlane.xlu0 %182  ;;  %v1860_v30 = vmul.f32 %v1831_v62, %v189_v15 }
  0x92   : > { %v1534_v23 = vpop.eup %1533  ;;  %v278_v24 = vmul.f32 %v1847_v16, %v213_v4  ;;  %v1854_v27 = vmul.f32 %v1831_v62, %v183_v20  ;;  %980 = vrot.lane.b32.xlu0 %v1797_v50, %s1639_s18  ;;  %vm283_vm5 = vweird.f32 %v1847_v16 }
  0x93   : > { %v1536_v28 = vpop.eup %1535  ;;  %v218_v29 = vmul.f32 %v1534_v23, %v209_v10  ;;  %1537 = vrcp.f32 %v1850_v19  ;;  %v303_v55 = vand.u32 2147483648, %v1850_v19  ;;  %vm223_vm9 = vweird.f32 %v1534_v23  ;;  %vm1883_vm10 = vmor %vm282_vm2, %vm283_vm5 }
  0x94   : > { %v279_v31 = vsub.f32 1.0, %v278_v24  ;;  %v248_v40 = vmul.f32 %v1536_v28, %v211_v9  ;;  %1539 = vrcp.f32 %v1854_v27  ;;  %vm253_vm8 = vweird.f32 %v1536_v28  ;;  %vm224_vm14 = vmor %vm222_vm3, %vm223_vm9 }
  0x95   : > { %v219_v48 = vsub.f32 1.0, %v218_v29  ;;  %978 = vrot.lane.b32.xlu2 %v1784_v45, %s1639_s18  ;;  %1541 = vrcp.f32 %v1860_v30  ;;  %vm1895_vm12 = vmor %vm252_vm4, %vm253_vm8  ;;  %vm297_vm13 = vweird.f32 %v1850_v19  ;;  %v301_v4 = vand.u32 2147483647, %v1850_v19 }
  0x96   : > { %v280_v52 = vmul.f32 %v1847_v16, %v279_v31  ;;  %v249_v53 = vsub.f32 1.0, %v248_v40  ;;  %982 = vrot.lane.b32.xlu1 %v1793_v47, %s1639_s18  ;;  %v241_v15 = vand.u32 2147483647, %v1854_v27  ;;  %v304_v20 = vor.u32 1.1754944e-38, %v303_v55 }
  0x97   : > { %v220_v57 = vmul.f32 %v1534_v23, %v219_v48  ;;  %v243_v24 = vand.u32 2147483648, %v1854_v27  ;;  %vm267_vm15 = vweird.f32 %v1860_v30  ;;  %v271_v31 = vand.u32 2147483647, %v1860_v30 }
  0x98   : > { %v281_v59 = vadd.f32 %v1847_v16, %v280_v52  ;;  %v250_v61 = vmul.f32 %v1536_v28, %v249_v53  ;;  %v1891_v5 = vpop.permute.xlu2 %386  ;;  %v273_v43 = vand.u32 2147483648, %v1860_v30  ;;  %v201_v52 = vpop.xlane.xlu1 %200  ;;  %vm302_vm5 = vcmp.eq.f32.partialorder %v301_v4, 8.507059e+37 }
  0x99   : > { %v1538_v11 = vpop.eup %1537  ;;  %v221_v12 = vadd.f32 %v1534_v23, %v220_v57  ;;  %v198_v48 = vpop.xlane.xlu0 %197  ;;  %v1935_v46 = vmul.f32 %v1831_v62, %v201_v52  ;;  %v244_v4 = vor.u32 1.1754944e-38, %v243_v24  ;;  %vm272_vm9 = vcmp.eq.f32.partialorder %v271_v31, 8.507059e+37 }
  0x9a   : > { %v251_v17 = vadd.f32 %v1536_v28, %v250_v61  ;;  %v293_v18 = vmul.f32 %v1538_v11, %v1850_v19  ;;  %v1540_v9 = vpop.eup %1539  ;;  %v285_v26 = vsel %vm1883_vm10, %v1847_v16, %v281_v59  ;;  %vm298_vm1 = vweird.f32 %v1538_v11 }
  0x9b   : > { %v225_v29 = vsel %vm224_vm14, %v1534_v23, %v221_v12  ;;  %v1542_v53 = vpop.eup %1541  ;;  %v233_v55 = vmul.f32 %v1540_v9, %v1854_v27  ;;  %v290_v49 = vsel %vm1863_vm6, %v289_v25, %v285_v26  ;;  %v1932_v60 = vmul.f32 %v1831_v62, %v198_v48  ;;  %vm299_vm3 = vmor %vm297_vm13, %vm298_vm1 }
  0x9c   : > { %v230_v10 = vsel %vm1867_vm7, %v229_v58, %v225_v29  ;;  %v255_v40 = vsel %vm1895_vm12, %v1536_v28, %v251_v17  ;;  %v294_v42 = vsub.f32 1.0, %v293_v18  ;;  %v263_v58 = vmul.f32 %v1542_v53, %v1860_v30 }
  0x9d   : > { %v338_v16 = vmul.f32 %v1845_v13, %v230_v10  ;;  %v260_v23 = vsel %vm1887_vm11, %v259_v3, %v255_v40  ;;  %v234_v59 = vsub.f32 1.0, %v233_v55  ;;  %vm268_vm2 = vweird.f32 %v1542_v53 }
  0x9e   : > { %v340_v57 = vmul.f32 %v1845_v13, %v260_v23  ;;  %v295_v28 = vmul.f32 %v1538_v11, %v294_v42  ;;  %v264_v61 = vsub.f32 1.0, %v263_v58  ;;  %v342_v14 = vmul.f32 %v1845_v13, %v290_v49  ;;  %vm1953_vm7 = vmor %vm267_vm15, %vm268_vm2 }
  0x9f   : > { %v346_v3 = vmul.f32 %v338_v16, %v1680_v2  ;;  %v235_v17 = vmul.f32 %v1540_v9, %v234_v59  ;;  %vm238_vm4 = vweird.f32 %v1540_v9  ;;  %1543 = vrcp.f32 %v1932_v60 }
  0xa0   : > { %v296_v25 = vadd.f32 %v1538_v11, %v295_v28  ;;  %v1937_v63 = vpop.permute.xlu2 %392  ;;  %v348_v12 = vmul.f32 %v340_v57, %v1677_v1  ;;  %v265_v26 = vmul.f32 %v1542_v53, %v264_v61  ;;  %1545 = vrcp.f32 %v1935_v46 }
  0xa1   : > { %354 = vst.msk [vmem:[%s1929_s23] sm:$0xff] %vm177_vm0, %v346_v3  ;;  %v236_v1 = vadd.f32 %v1540_v9, %v235_v17  ;;  %vm237_vm6 = vweird.f32 %v1854_v27  ;;  %v274_v29 = vor.u32 1.1754944e-38, %v273_v43  ;;  %vm242_vm10 = vcmp.eq.f32.partialorder %v241_v15, 8.507059e+37 }
  0xa2   : > { %v300_v18 = vsel %vm299_vm3, %v1538_v11, %v296_v25  ;;  %356 = vst.msk [vmem:[%s1929_s23 + $0x30] sm:$0xff] %vm177_vm0, %v348_v12  ;;  %vm239_vm8 = vmor %vm237_vm6, %vm238_vm4  ;;  %v266_v10 = vadd.f32 %v1542_v53, %v265_v26  ;;  %v350_v27 = vmul.f32 %v342_v14, %v1674_v0  ;;  %v318_v16 = vand.u32 2147483648, %v1932_v60 }
  0xa3   : > { %v305_v2 = vsel %vm302_vm5, %v304_v20, %v300_v18  ;;  %v240_v20 = vsel %vm239_vm8, %v1540_v9, %v236_v1  ;;  %v333_v23 = vand.u32 2147483648, %v1935_v46  ;;  %vm327_vm11 = vweird.f32 %v1935_v46 }
  0xa4   : > { %v343_v11 = vmul.f32 %v1845_v13, %v305_v2  ;;  %v245_v30 = vsel %vm242_vm10, %v244_v4, %v240_v20  ;;  %v270_v40 = vsel %vm1953_vm7, %v1542_v53, %v266_v10  ;;  %358 = vst.msk [vmem:[%s1929_s23 + $0x60] sm:$0xff] %vm177_vm0, %v350_v27  ;;  %v331_v57 = vand.u32 2147483647, %v1935_v46 }
  0xa5   : > { %v1544_v43 = vpop.eup %1543  ;;  %v339_v48 = vmul.f32 %v1845_v13, %v245_v30  ;;  %v275_v52 = vsel %vm272_vm9, %v274_v29, %v270_v40  ;;  %v316_v58 = vand.u32 2147483647, %v1932_v60  ;;  %vm312_vm14 = vweird.f32 %v1932_v60 }
  0xa6   : > { %v351_v42 = vmul.f32 %v343_v11, %v1686_v6  ;;  %v1546_v24 = vpop.eup %1545  ;;  %v341_v31 = vmul.f32 %v1845_v13, %v275_v52  ;;  %v308_v15 = vmul.f32 %v1544_v43, %v1932_v60  ;;  %vm313_vm13 = vweird.f32 %v1544_v43 }
  0xa7   : > { %v323_v0 = vmul.f32 %v1546_v24, %v1935_v46  ;;  %v347_v6 = vmul.f32 %v339_v48, %v1692_v8  ;;  %vm328_vm12 = vweird.f32 %v1546_v24  ;;  %v334_v61 = vor.u32 1.1754944e-38, %v333_v23  ;;  %vm314_vm1 = vmor %vm312_vm14, %vm313_vm13 }
  0xa8   : > { %v1969_v9 = vpop.permute.xlu2 %396  ;;  %359 = vst.msk [vmem:[%s1929_s23 + $0x78] sm:$0xff] %vm177_vm0, %v351_v42  ;;  %v309_v53 = vsub.f32 1.0, %v308_v15  ;;  %v349_v55 = vmul.f32 %v341_v31, %v1689_v7  ;;  %vm1986_vm15 = vmor %vm327_vm11, %vm328_vm12  ;;  %v410_v46 = vadd.f32 %v1891_v5, %v1715_v32  ;;  %v319_v3 = vor.u32 1.1754944e-38, %v318_v16 }
  0xa9   : > { %v324_v49 = vsub.f32 1.0, %v323_v0  ;;  %355 = vst.msk [vmem:[%s1929_s23 + $0x18] sm:$0xff] %vm177_vm0, %v347_v6  ;;  %vm332_vm2 = vcmp.eq.f32.partialorder %v331_v57, 8.507059e+37  ;;  %vm317_vm3 = vcmp.eq.f32.partialorder %v316_v58, 8.507059e+37  ;;  %v413_v4 = vadd.f32 %v1937_v63, %v1725_v34 }
  0xaa   : > { %v310_v28 = vmul.f32 %v1544_v43, %v309_v53  ;;  %357 = vst.msk [vmem:[%s1929_s23 + $0x48] sm:$0xff] %vm177_vm0, %v349_v55 }
  0xab   : > { %v325_v59 = vmul.f32 %v1546_v24, %v324_v49 }
  0xac   : > { %v389_v8 = vpop.permute.xlu0 %388  ;;  %v311_v25 = vadd.f32 %v1544_v43, %v310_v28 }
  0xad   : > { %v326_v12 = vadd.f32 %v1546_v24, %v325_v59 }
  0xae   : > { %v315_v14 = vsel %vm314_vm1, %v1544_v43, %v311_v25 }
  0xaf   : > { %v320_v26 = vsel %vm317_vm3, %v319_v3, %v315_v14  ;;  %v330_v60 = vsel %vm1986_vm15, %v1546_v24, %v326_v12 }
  0xb0   : > { %v419_v17 = vpop.permute.xlu2 %418  ;;  %v391_v18 = vpop.permute.xlu1 %390  ;;  %v344_v1 = vmul.f32 %v1845_v13, %v320_v26  ;;  %v335_v19 = vsel %vm332_vm2, %v334_v61, %v330_v60 }
  0xb1   : > { %v442_v2 = vadd.f32 %v419_v17, %v410_v46  ;;  %v345_v32 = vmul.f32 %v1845_v13, %v335_v19  ;;  %v412_v34 = vadd.f32 %v391_v18, %v1731_v35 }
  0xb2   : > { %v352_v29 = vmul.f32 %v344_v1, %v1704_v22 }
  0xb3   : > { %1547 = vrsqrt.f32 %v442_v2  ;;  %v353_v11 = vmul.f32 %v345_v32, %v1701_v21  ;;  %v411_v21 = vadd.f32 %v389_v8, %v1721_v33  ;;  %vm457_vm4 = vcmp.eq.f32.partialorder %v442_v2, inf }
  0xb4   : > { %v395_v5 = vpop.permute.xlu0 %394  ;;  %360 = vst.msk [vmem:[%s1929_s23 + $0x90] sm:$0xff] %vm177_vm0, %v352_v29  ;;  %v460_v23 = vand.u32 2147483648, %v442_v2  ;;  %vm459_vm5 = vcmp.eq.f32.partialorder %v442_v2, 0.0 }
  0xb5   : > { %361 = vst.msk [vmem:[%s1929_s23 + $0xa8] sm:$0xff] %vm177_vm0, %v353_v11  ;;  %v414_v49 = vadd.f32 %v395_v5, %v1739_v36  ;;  %v415_v36 = vadd.f32 %v1969_v9, %v1743_v37 }
  0xb8   : > { %v425_v10 = vpop.permute.xlu2 %424  ;;  %v399_v20 = vpop.permute.xlu1 %398 }
  0xb9   : > { %v1548_v27 = vpop.eup %1547  ;;  %v445_v30 = vadd.f32 %v425_v10, %v413_v4  ;;  %v416_v43 = vadd.f32 %v399_v20, %v1749_v38 }
  0xba   : > { %v451_v40 = vmul.f32 %v1548_v27, %v442_v2 }
  0xbb   : > { %1549 = vrsqrt.f32 %v445_v30  ;;  %vm493_vm6 = vcmp.eq.f32.partialorder %v445_v30, inf  ;;  %vm495_vm7 = vcmp.eq.f32.partialorder %v445_v30, 0.0 }
  0xbc   : > { %v401_v13 = vpop.permute.xlu0 %400  ;;  %v452_v42 = vmul.f32 %v1548_v27, %v451_v40 }
  0xbd   : > { %v417_v37 = vadd.f32 %v401_v13, %v1757_v39 }
  0xbe   : > { %v453_v22 = vmul.f32 0.5, %v452_v42 }
  0xc0   : > { %v431_v48 = vpop.permute.xlu2 %430  ;;  %v421_v52 = vpop.permute.xlu1 %420  ;;  %v454_v24 = vsub.f32 1.5, %v453_v22 }
  0xc1   : > { %v1550_v31 = vpop.eup %1549  ;;  %v2007_v63 = vadd.f32 %v431_v48, %v416_v43  ;;  %v2009_v15 = vadd.f32 %v421_v52, %v411_v21 }
  0xc2   : > { %v455_v0 = vmul.f32 %v1548_v27, %v454_v24  ;;  %v487_v6 = vmul.f32 %v1550_v31, %v445_v30 }
  0xc3   : > { %1551 = vrsqrt.f32 %v2007_v63  ;;  %vm529_vm8 = vcmp.eq.f32.partialorder %v2007_v63, inf  ;;  %vm531_vm9 = vcmp.eq.f32.partialorder %v2007_v63, 0.0  ;;  %vm469_vm10 = vcmp.eq.f32.partialorder %v2009_v15, inf }
  0xc4   : > { %1553 = vrsqrt.f32 %v2009_v15  ;;  %v423_v38 = vpop.permute.xlu0 %422  ;;  %v456_v53 = vmul.f32 %v455_v0, %v442_v2  ;;  %v488_v16 = vmul.f32 %v1550_v31, %v487_v6  ;;  %v472_v6 = vand.u32 2147483648, %v2009_v15 }
  0xc5   : > { %v2013_v33 = vadd.f32 %v423_v38, %v412_v34  ;;  %v532_v34 = vand.u32 2147483648, %v2007_v63  ;;  %vm471_vm11 = vcmp.eq.f32.partialorder %v2009_v15, 0.0 }
  0xc6   : > { %v458_v55 = vsel %vm457_vm4, %v442_v2, %v456_v53  ;;  %v489_v35 = vmul.f32 0.5, %v488_v16  ;;  %v496_v2 = vand.u32 2147483648, %v445_v30 }
  0xc7   : > { %1555 = vrsqrt.f32 %v2013_v33  ;;  %v461_v57 = vsel %vm459_vm5, %v460_v23, %v458_v55  ;;  %vm481_vm12 = vcmp.eq.f32.partialorder %v2013_v33, inf  ;;  %vm483_vm13 = vcmp.eq.f32.partialorder %v2013_v33, 0.0 }
  0xc8   : > { %v427_v28 = vpop.permute.xlu1 %426  ;;  %v2017_v58 = vpop.permute.xlu2 %910  ;;  %v546_v8 = vmax.f32 %v461_v57, 0.00024414063  ;;  %v490_v59 = vsub.f32 1.5, %v489_v35 }
  0xc9   : > { %v1552_v25 = vpop.eup %1551  ;;  %v2019_v7 = vadd.f32 %v427_v28, %v414_v49 }
  0xca   : > { %v1554_v61 = vpop.eup %1553  ;;  %562 = vrot.lane.b32.xlu0 %v546_v8, %s1636_s16  ;;  %v491_v46 = vmul.f32 %v1550_v31, %v490_v59  ;;  %v523_v3 = vmul.f32 %v1552_v25, %v2007_v63 }
  0xcb   : > { %1557 = vrsqrt.f32 %v2019_v7  ;;  %v463_v12 = vmul.f32 %v1554_v61, %v2009_v15  ;;  %vm505_vm14 = vcmp.eq.f32.partialorder %v2019_v7, inf  ;;  %vm507_vm15 = vcmp.eq.f32.partialorder %v2019_v7, 0.0 }
  0xcc   : > { %v429_v14 = vpop.permute.xlu0 %428  ;;  %v492_v17 = vmul.f32 %v491_v46, %v445_v30  ;;  %v524_v18 = vmul.f32 %v1552_v25, %v523_v3  ;;  %v484_v46 = vand.u32 2147483648, %v2013_v33 }
  0xcd   : > { %v1556_v26 = vpop.eup %1555  ;;  %v2027_v60 = vadd.f32 %v429_v14, %v415_v36  ;;  %v464_v1 = vmul.f32 %v1554_v61, %v463_v12 }
  0xce   : > { %v494_v19 = vsel %vm493_vm6, %v445_v30, %v492_v17  ;;  %v525_v32 = vmul.f32 0.5, %v524_v18  ;;  %v475_v5 = vmul.f32 %v1556_v26, %v2013_v33 }
  0xcf   : > { %1559 = vrsqrt.f32 %v2027_v60  ;;  %v497_v9 = vsel %vm495_vm7, %v496_v2, %v494_v19  ;;  %v465_v29 = vmul.f32 0.5, %v464_v1  ;;  %v508_v19 = vand.u32 2147483648, %v2019_v7 }
  0xd0   : > { %v433_v11 = vpop.permute.xlu1 %432  ;;  %v2032_v4 = vpop.permute.xlu2 %916  ;;  %v549_v10 = vmax.f32 %v497_v9, 0.00024414063  ;;  %v526_v20 = vsub.f32 1.5, %v525_v32  ;;  %v476_v27 = vmul.f32 %v1556_v26, %v475_v5  ;;  %vm517_vm1 = vcmp.eq.f32.partialorder %v2027_v60, inf }
  0xd1   : > { %v1558_v40 = vpop.eup %1557  ;;  %v2034_v42 = vadd.f32 %v433_v11, %v417_v37  ;;  %v466_v43 = vsub.f32 1.5, %v465_v29  ;;  %vm519_vm2 = vcmp.eq.f32.partialorder %v2027_v60, 0.0 }
  0xd2   : > { %568 = vrot.lane.b32.xlu0 %v549_v10, %s1636_s16  ;;  %v527_v30 = vmul.f32 %v1552_v25, %v526_v20  ;;  %v477_v22 = vmul.f32 0.5, %v476_v27  ;;  %v499_v39 = vmul.f32 %v1558_v40, %v2019_v7 }
  0xd3   : > { %1561 = vrsqrt.f32 %v2034_v42  ;;  %v467_v13 = vmul.f32 %v1554_v61, %v466_v43  ;;  %vm541_vm3 = vcmp.eq.f32.partialorder %v2034_v42, inf  ;;  %vm543_vm4 = vcmp.eq.f32.partialorder %v2034_v42, 0.0 }
  0xd4   : > { %v2040_v21 = vpop.permute.xlu0 %912  ;;  %v528_v48 = vmul.f32 %v527_v30, %v2007_v63  ;;  %v478_v52 = vsub.f32 1.5, %v477_v22  ;;  %v500_v24 = vmul.f32 %v1558_v40, %v499_v39 }
  0xd5   : > { %v1560_v31 = vpop.eup %1559  ;;  %v468_v0 = vmul.f32 %v467_v13, %v2009_v15 }
  0xd6   : > { %v530_v38 = vsel %vm529_vm8, %v2007_v63, %v528_v48  ;;  %v479_v53 = vmul.f32 %v1556_v26, %v478_v52  ;;  %v501_v16 = vmul.f32 0.5, %v500_v24  ;;  %v511_v23 = vmul.f32 %v1560_v31, %v2027_v60 }
  0xd7   : > { %v533_v55 = vsel %vm531_vm9, %v532_v34, %v530_v38  ;;  %v470_v35 = vsel %vm469_vm10, %v2009_v15, %v468_v0  ;;  %v544_v48 = vand.u32 2147483648, %v2034_v42 }
  0xd8   : > { %v2052_v49 = vpop.permute.xlu1 %914  ;;  %v2054_v57 = vpop.permute.xlu2 %922  ;;  %v552_v28 = vmax.f32 %v533_v55, 0.00024414063  ;;  %v473_v8 = vsel %vm471_vm11, %v472_v6, %v470_v35  ;;  %v480_v59 = vmul.f32 %v479_v53, %v2013_v33  ;;  %v502_v25 = vsub.f32 1.5, %v501_v16  ;;  %v2098_v35 = vld [vmem:[%s1671_s15 + $0x40] sm:$0xff] }
  0xd9   : > { %v1562_v61 = vpop.eup %1561  ;;  %v547_v63 = vmax.f32 %v473_v8, 0.00024414063  ;;  %v512_v3 = vmul.f32 %v1560_v31, %v511_v23 }
  0xda   : > { %574 = vrot.lane.b32.xlu0 %v552_v28, %s1636_s16  ;;  %v482_v15 = vsel %vm481_vm12, %v2013_v33, %v480_v59  ;;  %v503_v36 = vmul.f32 %v1558_v40, %v502_v25  ;;  %v535_v12 = vmul.f32 %v1562_v61, %v2034_v42  ;;  %v520_v40 = vand.u32 2147483648, %v2027_v60 }
  0xdb   : > { %564 = vrot.lane.b32.xlu2 %v547_v63, %s1636_s16  ;;  %v485_v14 = vsel %vm483_vm13, %v484_v46, %v482_v15  ;;  %v513_v17 = vmul.f32 0.5, %v512_v3  ;;  %v940_v28 = vadd.f32 %v2054_v57, %v1811_v56  ;;  %v2118_v57 = vld [vmem:[%s1671_s15 + $0x28] sm:$0xff]  ;;  %v937_v15 = vadd.f32 %v2032_v4, %v1797_v50  ;;  %v2134_v4 = vld [vmem:[%s1671_s15 + $0x70] sm:$0xff] }
  0xdc   : > { %v548_v18 = vmax.f32 %v485_v14, 0.00024414063  ;;  %v2064_v26 = vpop.permute.xlu0 %918  ;;  %v504_v2 = vmul.f32 %v503_v36, %v2019_v7  ;;  %v536_v1 = vmul.f32 %v1562_v61, %v535_v12 }
  0xdd   : > { %v514_v32 = vsub.f32 1.5, %v513_v17  ;;  %v2125_v17 = vld [vmem:[%s1671_s15 + $0x58] sm:$0xff] }
  0xde   : > { %566 = vrot.lane.b32.xlu1 %v548_v18, %s1636_s16  ;;  %v506_v33 = vsel %vm505_vm14, %v2019_v7, %v504_v2  ;;  %v537_v5 = vmul.f32 0.5, %v536_v1  ;;  %v938_v18 = vadd.f32 %v2064_v26, %v1793_v47  ;;  %v1009_v50 = vmul.f32 %v2125_v17, %v2125_v17 }
  0xdf   : > { %v509_v37 = vsel %vm507_vm15, %v508_v19, %v506_v33  ;;  %v515_v9 = vmul.f32 %v1560_v31, %v514_v32  ;;  %v1010_v47 = vmul.f32 %v2134_v4, %v2134_v4 }
  0xe0   : > { %v921_v29 = vpop.permute.xlu1 %920  ;;  %v945_v11 = vpop.permute.xlu2 %944  ;;  %v550_v10 = vmax.f32 %v509_v37, 0.00024414063  ;;  %v538_v20 = vsub.f32 1.5, %v537_v5 }
  0xe1   : > { %v516_v27 = vmul.f32 %v515_v9, %v2027_v60  ;;  %v939_v16 = vadd.f32 %v921_v29, %v1799_v51 }
  0xe2   : > { %986 = vrot.lane.b32.xlu0 %v1811_v56, %s1639_s18  ;;  %v539_v43 = vmul.f32 %v1562_v61, %v538_v20  ;;  %v2109_v61 = vld [vmem:[%s1671_s15 + $0x10] sm:$0xff] }
  0xe3   : > { %570 = vrot.lane.b32.xlu2 %v550_v10, %s1636_s16  ;;  %v518_v7 = vsel %vm517_vm1, %v2027_v60, %v516_v27  ;;  %v1006_v56 = vmul.f32 %v2109_v61, %v2109_v61 }
  0xe4   : > { %v521_v30 = vsel %vm519_vm2, %v520_v40, %v518_v7  ;;  %v925_v22 = vpop.permute.xlu0 %924  ;;  %v540_v39 = vmul.f32 %v539_v43, %v2034_v42 }
  0xe5   : > { %v551_v13 = vmax.f32 %v521_v30, 0.00024414063  ;;  %v941_v6 = vadd.f32 %v925_v22, %v1808_v54 }
  0xe6   : > { %v542_v52 = vsel %vm541_vm3, %v2034_v42, %v540_v39  ;;  %v936_v42 = vadd.f32 %v2052_v49, %v1784_v45  ;;  %v1008_v45 = vmul.f32 %v2098_v35, %v2098_v35 }
  0xe7   : > { %572 = vrot.lane.b32.xlu1 %v551_v13, %s1636_s16  ;;  %v545_v24 = vsel %vm543_vm4, %v544_v48, %v542_v52 }
  0xe8   : > { %v943_v31 = vpop.permute.xlu1 %942  ;;  %v951_v34 = vpop.permute.xlu2 %950  ;;  %v553_v60 = vmax.f32 %v545_v24, 0.00024414063 }
  0xe9   : > { %v970_v37 = vadd.f32 %v951_v34, %v938_v18 }
  0xeb   : > { %576 = vrot.lane.b32.xlu2 %v553_v60, %s1636_s16 }
  0xec   : > { %v947_v0 = vpop.permute.xlu0 %946 }
  0xed   : > { %v968_v8 = vadd.f32 %v947_v0, %v936_v42 }
  0xef   : > { %988 = vrot.lane.b32.xlu1 %v1808_v54, %s1639_s18  ;;  %v934_v54 = vadd.f32 %v2017_v58, %v1782_v44 }
  0xf0   : > { %v949_v38 = vpop.permute.xlu1 %948  ;;  %v957_v53 = vpop.permute.xlu2 %956 }
  0xf1   : > { %v2093_v23 = vadd.f32 %v957_v53, %v941_v6  ;;  %v966_v63 = vadd.f32 %v943_v31, %v934_v54  ;;  %v969_v2 = vadd.f32 %v949_v38, %v937_v15 }
  0xf3   : > { %984 = vrot.lane.b32.xlu2 %v1799_v51, %s1639_s18  ;;  %v935_v51 = vadd.f32 %v2040_v21, %v1778_v41  ;;  %v1007_v41 = vmul.f32 %v2118_v57, %v2118_v57 }
  0xf4   : > { %v953_v55 = vpop.permute.xlu0 %952 }
  0xf5   : > { %v2104_v59 = vadd.f32 %v953_v55, %v939_v16  ;;  %v967_v36 = vadd.f32 %v945_v11, %v935_v51 }
  0xf8   : > { %v955_v49 = vpop.permute.xlu1 %954  ;;  %v979_v25 = vpop.permute.xlu2 %978 }
  0xf9   : > { %v2113_v46 = vadd.f32 %v955_v49, %v940_v28  ;;  %v1000_v44 = vadd.f32 %v979_v25, %v968_v8 }
  0xfb   : > { %v1016_v58 = vadd.f32 %v1008_v45, %v1000_v44 }
  0xfc   : > { %v975_v3 = vpop.permute.xlu0 %974 }
  0xfd   : > { %1563 = vrsqrt.f32 %v1016_v58  ;;  %v998_v12 = vadd.f32 %v975_v3, %v966_v63  ;;  %vm1053_vm5 = vcmp.eq.f32.partialorder %v1016_v58, inf  ;;  %v1056_v52 = vand.u32 2147483648, %v1016_v58 }
  0xfe   : > { %vm1055_vm6 = vcmp.eq.f32.partialorder %v1016_v58, 0.0 }
  0xff   : > { %v1014_v21 = vadd.f32 %v1006_v56, %v998_v12 }
 0x100   : > { %v977_v14 = vpop.permute.xlu1 %976 }
 0x101   : > { %v999_v1 = vadd.f32 %v977_v14, %v967_v36  ;;  %1565 = vrsqrt.f32 %v1014_v21  ;;  %vm1029_vm7 = vcmp.eq.f32.partialorder %v1014_v21, inf  ;;  %vm1031_vm8 = vcmp.eq.f32.partialorder %v1014_v21, 0.0 }
 0x102   : > { %v1032_v16 = vand.u32 2147483648, %v1014_v21 }
 0x103   : > { %v1564_v19 = vpop.eup %1563  ;;  %v2129_v32 = vadd.f32 %v1007_v41, %v999_v1 }
 0x104   : > { %v981_v33 = vpop.permute.xlu0 %980  ;;  %v1047_v5 = vmul.f32 %v1564_v19, %v1016_v58 }
 0x105   : > { %1567 = vrsqrt.f32 %v2129_v32  ;;  %v1001_v9 = vadd.f32 %v981_v33, %v969_v2  ;;  %vm1041_vm9 = vcmp.eq.f32.partialorder %v2129_v32, inf  ;;  %vm1043_vm10 = vcmp.eq.f32.partialorder %v2129_v32, 0.0 }
 0x106   : > { %v1048_v29 = vmul.f32 %v1564_v19, %v1047_v5  ;;  %v1044_v63 = vand.u32 2147483648, %v2129_v32 }
 0x107   : > { %v1566_v11 = vpop.eup %1565  ;;  %v2139_v26 = vadd.f32 %v1009_v50, %v1001_v9 }
 0x108   : > { %v983_v10 = vpop.permute.xlu1 %982  ;;  %v1049_v20 = vmul.f32 0.5, %v1048_v29  ;;  %v1023_v27 = vmul.f32 %v1566_v11, %v1014_v21 }
 0x109   : > { %v1002_v40 = vadd.f32 %v983_v10, %v970_v37  ;;  %1569 = vrsqrt.f32 %v2139_v26  ;;  %vm1065_vm11 = vcmp.eq.f32.partialorder %v2139_v26, inf  ;;  %v1068_v50 = vand.u32 2147483648, %v2139_v26 }
 0x10a   : > { %v1050_v43 = vsub.f32 1.5, %v1049_v20  ;;  %v1024_v7 = vmul.f32 %v1566_v11, %v1023_v27  ;;  %vm1067_vm12 = vcmp.eq.f32.partialorder %v2139_v26, 0.0 }
 0x10b   : > { %v1568_v30 = vpop.eup %1567  ;;  %v2142_v22 = vadd.f32 %v1010_v47, %v1002_v40 }
 0x10c   : > { %v1051_v39 = vmul.f32 %v1564_v19, %v1050_v43  ;;  %v1035_v13 = vmul.f32 %v1568_v30, %v2129_v32  ;;  %v1025_v48 = vmul.f32 0.5, %v1024_v7 }
 0x10d   : > { %1571 = vrsqrt.f32 %v2142_v22  ;;  %vm1077_vm13 = vcmp.eq.f32.partialorder %v2142_v22, inf  ;;  %v1080_v37 = vand.u32 2147483648, %v2142_v22  ;;  %vm1079_vm14 = vcmp.eq.f32.partialorder %v2142_v22, 0.0 }
 0x10e   : > { %v1052_v24 = vmul.f32 %v1051_v39, %v1016_v58  ;;  %v1036_v31 = vmul.f32 %v1568_v30, %v1035_v13  ;;  %v1026_v34 = vsub.f32 1.5, %v1025_v48 }
 0x10f   : > { %v1570_v60 = vpop.eup %1569 }
 0x110   : > { %v1054_v0 = vsel %vm1053_vm5, %v1016_v58, %v1052_v24  ;;  %v1037_v6 = vmul.f32 0.5, %v1036_v31  ;;  %v1027_v38 = vmul.f32 %v1566_v11, %v1026_v34  ;;  %v1059_v53 = vmul.f32 %v1570_v60, %v2139_v26  ;;  %v2174_v24 = vld [vmem:[%s1671_s15 + $0x88] sm:$0xff] }
 0x111   : > { %v1057_v42 = vsel %vm1055_vm6, %v1056_v52, %v1054_v0  ;;  %v1011_v31 = vmul.f32 %v2174_v24, %v2174_v24 }
 0x112   : > { %v1120_v55 = vmax.f32 %v1057_v42, 0.00024414063  ;;  %v1038_v54 = vsub.f32 1.5, %v1037_v6  ;;  %v1028_v28 = vmul.f32 %v1027_v38, %v1014_v21  ;;  %v1060_v8 = vmul.f32 %v1570_v60, %v1059_v53  ;;  %v2182_v53 = vld [vmem:[%s1671_s15 + $0xa0] sm:$0xff] }
 0x113   : > { %v1572_v45 = vpop.eup %1571  ;;  %v1012_v42 = vmul.f32 %v2182_v53, %v2182_v53 }
 0x114   : > { %v1039_v49 = vmul.f32 %v1568_v30, %v1038_v54  ;;  %v1030_v25 = vsel %vm1029_vm7, %v1014_v21, %v1028_v28  ;;  %v1071_v51 = vmul.f32 %v1572_v45, %v2142_v22  ;;  %v1061_v58 = vmul.f32 0.5, %v1060_v8 }
 0x115   : > { %v1033_v44 = vsel %vm1031_vm8, %v1032_v16, %v1030_v25  ;;  %v1132_v56 = vsel %vm177_vm0, %v1120_v55, 0.0  ;;  %v2188_v25 = vld [vmem:[%s1671_s15 + $0xb8] sm:$0xff] }
 0x116   : > { %v1040_v3 = vmul.f32 %v1039_v49, %v2129_v32  ;;  %v1118_v15 = vmax.f32 %v1033_v44, 0.00024414063  ;;  %v1072_v36 = vmul.f32 %v1572_v45, %v1071_v51  ;;  %v1062_v12 = vsub.f32 1.5, %v1061_v58 }
 0x117   : > { %v1013_v44 = vmul.f32 %v2188_v25, %v2188_v25 }
 0x118   : > { %v1042_v41 = vsel %vm1041_vm9, %v2129_v32, %v1040_v3  ;;  %v1073_v14 = vmul.f32 0.5, %v1072_v36  ;;  %v1126_v18 = vsel %vm177_vm0, %v1118_v15, 0.0  ;;  %v1063_v2 = vmul.f32 %v1570_v60, %v1062_v12 }
 0x119   : > { %1133 = vadd.xlane.f32.xlu1 %v1132_v56  ;;  %v1045_v21 = vsel %vm1043_vm10, %v1044_v63, %v1042_v41 }
 0x11a   : > { %v1119_v1 = vmax.f32 %v1045_v21, 0.00024414063  ;;  %v1074_v19 = vsub.f32 1.5, %v1073_v14  ;;  %v1064_v33 = vmul.f32 %v1063_v2, %v2139_v26 }
 0x11c   : > { %v1129_v5 = vsel %vm177_vm0, %v1119_v1, 0.0  ;;  %1127 = vadd.xlane.f32.xlu2 %v1126_v18  ;;  %v1075_v32 = vmul.f32 %v1572_v45, %v1074_v19  ;;  %v1066_v9 = vsel %vm1065_vm11, %v2139_v26, %v1064_v33 }
 0x11d   : > { %1130 = vadd.xlane.f32.xlu0 %v1129_v5  ;;  %v1069_v11 = vsel %vm1067_vm12, %v1068_v50, %v1066_v9 }
 0x11e   : > { %v1076_v29 = vmul.f32 %v1075_v32, %v2142_v22  ;;  %v1121_v47 = vmax.f32 %v1069_v11, 0.00024414063 }
 0x120   : > { %v1078_v10 = vsel %vm1077_vm13, %v2142_v22, %v1076_v29  ;;  %v1135_v27 = vsel %vm177_vm0, %v1121_v47, 0.0 }
 0x121   : > { %v1081_v20 = vsel %vm1079_vm14, %v1080_v37, %v1078_v10 }
 0x122   : > { %v1122_v40 = vmax.f32 %v1081_v20, 0.00024414063 }
 0x124   : > { %v1138_v43 = vsel %vm177_vm0, %v1122_v40, 0.0  ;;  %1136 = vadd.xlane.f32.xlu2 %v1135_v27 }
 0x125   : > { %1139 = vadd.xlane.f32.xlu0 %v1138_v43 }
 0x135   : > { %v565_v7 = vpop.permute.xlu2 %564 }
 0x136   : > { %v589_v26 = vsel %vm177_vm0, %v565_v7, 0.0 }
 0x137   : > { %590 = vadd.xlane.f32.xlu0 %v589_v26 }
 0x13c   : > { %v563_v30 = vpop.permute.xlu0 %562 }
 0x13d   : > { %v571_v39 = vpop.permute.xlu2 %570  ;;  %v586_v10 = vsel %vm177_vm0, %v563_v30, 0.0 }
 0x13e   : > { %v598_v13 = vsel %vm177_vm0, %v571_v39, 0.0 }
 0x13f   : > { %599 = vadd.xlane.f32.xlu0 %v598_v13 }
 0x144   : > { %v2170_v22 = vpop.permute.xlu0 %568 }
 0x145   : > { %v577_v48 = vpop.permute.xlu2 %576  ;;  %v595_v39 = vsel %vm177_vm0, %v2170_v22, 0.0 }
 0x146   : > { %v607_v52 = vsel %vm177_vm0, %v577_v48, 0.0 }
 0x147   : > { %608 = vadd.xlane.f32.xlu0 %v607_v52 }
 0x14c   : > { %v2178_v34 = vpop.permute.xlu0 %574 }
 0x14d   : > { %v985_v60 = vpop.permute.xlu2 %984 }
 0x14e   : > { %v1003_v0 = vadd.f32 %v985_v60, %v2104_v59  ;;  %v604_v60 = vsel %vm177_vm0, %v2178_v34, 0.0 }
 0x150   : > { %v1019_v6 = vadd.f32 %v1011_v31, %v1003_v0  ;;  %v567_v38 = vpop.permute.xlu1 %566 }
 0x151   : > { %v592_v7 = vsel %vm177_vm0, %v567_v38, 0.0 }
 0x152   : > { %1573 = vrsqrt.f32 %v1019_v6  ;;  %vm1089_vm15 = vcmp.eq.f32.partialorder %v1019_v6, inf  ;;  %v1092_v41 = vand.u32 2147483648, %v1019_v6  ;;  %vm1091_vm1 = vcmp.eq.f32.partialorder %v1019_v6, 0.0 }
 0x154   : > { %v987_v16 = vpop.permute.xlu0 %986 }
 0x155   : > { %v1004_v55 = vadd.f32 %v987_v16, %v2113_v46 }
 0x157   : > { %v1020_v54 = vadd.f32 %v1012_v42, %v1004_v55 }
 0x158   : > { %v1574_v28 = vpop.eup %1573 }
 0x159   : > { %1575 = vrsqrt.f32 %v1020_v54  ;;  %v573_v8 = vpop.permute.xlu1 %572  ;;  %v1083_v45 = vmul.f32 %v1574_v28, %v1019_v6  ;;  %vm1101_vm2 = vcmp.eq.f32.partialorder %v1020_v54, inf  ;;  %v1104_v5 = vand.u32 2147483648, %v1020_v54 }
 0x15a   : > { %vm1103_vm3 = vcmp.eq.f32.partialorder %v1020_v54, 0.0  ;;  %v601_v31 = vsel %vm177_vm0, %v573_v8, 0.0 }
 0x15b   : > { %v1084_v49 = vmul.f32 %v1574_v28, %v1083_v45 }
 0x15d   : > { %v1085_v59 = vmul.f32 0.5, %v1084_v49 }
 0x15f   : > { %v1576_v51 = vpop.eup %1575  ;;  %v1086_v63 = vsub.f32 1.5, %v1085_v59 }
 0x160   : > { %v1095_v58 = vmul.f32 %v1576_v51, %v1020_v54 }
 0x161   : > { %v989_v56 = vpop.permute.xlu1 %988  ;;  %v1087_v3 = vmul.f32 %v1574_v28, %v1086_v63 }
 0x162   : > { %v1005_v15 = vadd.f32 %v989_v56, %v2093_v23  ;;  %v1096_v46 = vmul.f32 %v1576_v51, %v1095_v58 }
 0x163   : > { %v1088_v36 = vmul.f32 %v1087_v3, %v1019_v6 }
 0x164   : > { %v1021_v12 = vadd.f32 %v1013_v44, %v1005_v15  ;;  %v1097_v14 = vmul.f32 0.5, %v1096_v46 }
 0x165   : > { %v1090_v21 = vsel %vm1089_vm15, %v1019_v6, %v1088_v36 }
 0x166   : > { %1577 = vrsqrt.f32 %v1021_v12  ;;  %v1093_v18 = vsel %vm1091_vm1, %v1092_v41, %v1090_v21  ;;  %v1098_v2 = vsub.f32 1.5, %v1097_v14  ;;  %vm1113_vm4 = vcmp.eq.f32.partialorder %v1021_v12, inf }
 0x167   : > { %v1123_v1 = vmax.f32 %v1093_v18, 0.00024414063  ;;  %v1116_v26 = vand.u32 2147483648, %v1021_v12  ;;  %vm1115_vm5 = vcmp.eq.f32.partialorder %v1021_v12, 0.0  ;;  %v2217_v18 = vld [vmem:[%s2790_s0] sm:$0x7] }
 0x168   : > { %v1099_v19 = vmul.f32 %v1576_v51, %v1098_v2  ;;  %v2220_v2 = vperm.slane %v2217_v18, 2 }
 0x169   : > { %v1141_v50 = vsel %vm177_vm0, %v1123_v1, 0.0 }
 0x16a   : > { %1142 = vadd.xlane.f32.xlu1 %v1141_v50  ;;  %v1100_v33 = vmul.f32 %v1099_v19, %v1020_v54 }
 0x16c   : > { %v1578_v23 = vpop.eup %1577  ;;  %v1102_v32 = vsel %vm1101_vm2, %v1020_v54, %v1100_v33 }
 0x16d   : > { %v1105_v37 = vsel %vm1103_vm3, %v1104_v5, %v1102_v32  ;;  %v1107_v9 = vmul.f32 %v1578_v23, %v1021_v12 }
 0x16e   : > { %v1124_v29 = vmax.f32 %v1105_v37, 0.00024414063 }
 0x16f   : > { %v1108_v11 = vmul.f32 %v1578_v23, %v1107_v9 }
 0x170   : > { %v1144_v47 = vsel %vm177_vm0, %v1124_v29, 0.0 }
 0x171   : > { %1145 = vadd.xlane.f32.xlu2 %v1144_v47  ;;  %v1109_v20 = vmul.f32 0.5, %v1108_v11 }
 0x172   : > { %587 = vadd.xlane.f32.xlu1 %v586_v10 }
 0x173   : > { %v1110_v27 = vsub.f32 1.5, %v1109_v20 }
 0x175   : > { %v1111_v40 = vmul.f32 %v1578_v23, %v1110_v27 }
 0x177   : > { %v1112_v43 = vmul.f32 %v1111_v40, %v1021_v12 }
 0x179   : > { %593 = vadd.xlane.f32.xlu2 %v592_v7  ;;  %v1114_v13 = vsel %vm1113_vm4, %v1021_v12, %v1112_v43 }
 0x17a   : > { %596 = vadd.xlane.f32.xlu1 %v595_v39  ;;  %v1117_v48 = vsel %vm1115_vm5, %v1116_v26, %v1114_v13 }
 0x17b   : > { %v1125_v52 = vmax.f32 %v1117_v48, 0.00024414063 }
 0x17d   : > { %v1147_v30 = vsel %vm177_vm0, %v1125_v52, 0.0 }
 0x17e   : > { %1148 = vadd.xlane.f32.xlu0 %v1147_v30 }
 0x181   : > { %602 = vadd.xlane.f32.xlu2 %v601_v31 }
 0x182   : > { %605 = vadd.xlane.f32.xlu1 %v604_v60 }
 0x18c   : > { %v1134_v0 = vpop.xlane.xlu1 %1133 }
 0x18d   : > { %v1152_v6 = vmul.f32 %v1134_v0, %v1831_v62 }
 0x18f   : > { %1579 = vrcp.f32 %v1152_v6  ;;  %v1128_v22 = vpop.xlane.xlu2 %1127  ;;  %vm1193_vm6 = vweird.f32 %v1152_v6  ;;  %v1197_v28 = vand.u32 2147483647, %v1152_v6  ;;  %v1199_v49 = vand.u32 2147483648, %v1152_v6 }
 0x190   : > { %v1131_v38 = vpop.xlane.xlu0 %1130  ;;  %v1150_v42 = vmul.f32 %v1128_v22, %v1831_v62 }
 0x191   : > { %v1151_v16 = vmul.f32 %v1131_v38, %v1831_v62  ;;  %vm1198_vm11 = vcmp.eq.f32.partialorder %v1197_v28, 8.507059e+37  ;;  %v1200_v1 = vor.u32 1.1754944e-38, %v1199_v49  ;;  %v2287_v49 = vld [vmem:[%s1671_s15 + $0x20] sm:$0xff] }
 0x192   : > { %1581 = vrcp.f32 %v1150_v42  ;;  %vm1163_vm7 = vweird.f32 %v1150_v42  ;;  %v1167_v58 = vand.u32 2147483647, %v1150_v42  ;;  %v1169_v56 = vand.u32 2147483648, %v1150_v42 }
 0x193   : > { %1583 = vrcp.f32 %v1151_v16  ;;  %v1182_v36 = vand.u32 2147483647, %v1151_v16  ;;  %v1184_v21 = vand.u32 2147483648, %v1151_v16  ;;  %vm1178_vm12 = vweird.f32 %v1151_v16 }
 0x194   : > { %vm2228_vm15 = vcmp.eq.f32.partialorder %v1167_v58, 8.507059e+37  ;;  %v1170_v9 = vor.u32 1.1754944e-38, %v1169_v56 }
 0x195   : > { %v1580_v55 = vpop.eup %1579  ;;  %vm2232_vm1 = vcmp.eq.f32.partialorder %v1182_v36, 8.507059e+37  ;;  %v1185_v10 = vor.u32 1.1754944e-38, %v1184_v21  ;;  %v2328_v21 = vld [vmem:[%s1671_s15 + $0x50] sm:$0xff] }
 0x196   : > { %v1189_v54 = vmul.f32 %v1580_v55, %v1152_v6  ;;  %vm1194_vm8 = vweird.f32 %v1580_v55 }
 0x197   : > { %v1137_v8 = vpop.xlane.xlu2 %1136  ;;  %vm1195_vm10 = vmor %vm1193_vm6, %vm1194_vm8 }
 0x198   : > { %v1582_v34 = vpop.eup %1581  ;;  %v1190_v45 = vsub.f32 1.0, %v1189_v54  ;;  %v1140_v59 = vpop.xlane.xlu0 %1139  ;;  %v2207_v51 = vmul.f32 %v1137_v8, %v1831_v62 }
 0x199   : > { %v1584_v63 = vpop.eup %1583  ;;  %v1159_v44 = vmul.f32 %v1582_v34, %v1150_v42  ;;  %v2210_v3 = vmul.f32 %v1140_v59, %v1831_v62  ;;  %vm1164_vm9 = vweird.f32 %v1582_v34 }
 0x19a   : > { %v1191_v15 = vmul.f32 %v1580_v55, %v1190_v45  ;;  %v1174_v46 = vmul.f32 %v1584_v63, %v1151_v16  ;;  %1585 = vrcp.f32 %v2207_v51  ;;  %vm1179_vm13 = vweird.f32 %v1584_v63  ;;  %vm2224_vm14 = vmor %vm1163_vm7, %vm1164_vm9 }
 0x19b   : > { %v1160_v12 = vsub.f32 1.0, %v1159_v44  ;;  %1587 = vrcp.f32 %v2210_v3  ;;  %v1227_v20 = vand.u32 2147483647, %v2210_v3  ;;  %vm1180_vm2 = vmor %vm1178_vm12, %vm1179_vm13  ;;  %vm1208_vm3 = vweird.f32 %v2207_v51 }
 0x19c   : > { %v1192_v41 = vadd.f32 %v1580_v55, %v1191_v15  ;;  %v1175_v14 = vsub.f32 1.0, %v1174_v46  ;;  %v1214_v7 = vand.u32 2147483648, %v2207_v51  ;;  %v1212_v13 = vand.u32 2147483647, %v2207_v51 }
 0x19d   : > { %v1161_v19 = vmul.f32 %v1582_v34, %v1160_v12  ;;  %v1229_v42 = vand.u32 2147483648, %v2210_v3  ;;  %vm1223_vm8 = vweird.f32 %v2210_v3 }
 0x19e   : > { %v1176_v50 = vmul.f32 %v1584_v63, %v1175_v14  ;;  %v1196_v23 = vsel %vm1195_vm10, %v1580_v55, %v1192_v41  ;;  %v1215_v55 = vor.u32 1.1754944e-38, %v1214_v7  ;;  %vm1213_vm7 = vcmp.eq.f32.partialorder %v1212_v13, 8.507059e+37  ;;  %v2323_v41 = vld [vmem:[%s1671_s15 + $0x68] sm:$0xff] }
 0x19f   : > { %v1162_v37 = vadd.f32 %v1582_v34, %v1161_v19  ;;  %v1201_v29 = vsel %vm1198_vm11, %v1200_v1, %v1196_v23  ;;  %vm1228_vm10 = vcmp.eq.f32.partialorder %v1227_v20, 8.507059e+37 }
 0x1a0   : > { %v1586_v11 = vpop.eup %1585  ;;  %v1177_v47 = vadd.f32 %v1584_v63, %v1176_v50  ;;  %v2238_v27 = vmul.f32 %v2220_v2, %v1201_v29 }
 0x1a1   : > { %v1588_v40 = vpop.eup %1587  ;;  %v1204_v43 = vmul.f32 %v1586_v11, %v2207_v51  ;;  %v1166_v26 = vsel %vm2224_vm14, %v1582_v34, %v1162_v37  ;;  %vm1209_vm4 = vweird.f32 %v1586_v11  ;;  %v2292_v51 = vld [vmem:[%s1671_s15 + $0x8] sm:$0xff] }
 0x1a2   : > { %v1219_v39 = vmul.f32 %v1588_v40, %v2210_v3  ;;  %1315 = vrot.lane.b32.xlu0 %v2238_v27, %s1639_s18  ;;  %v1433_v48 = vmul.f32 %v2238_v27, %v2098_v35  ;;  %v1181_v52 = vsel %vm1180_vm2, %v1584_v63, %v1177_v47  ;;  %v1171_v60 = vsel %vm2228_vm15, %v1170_v9, %v1166_v26  ;;  %v2265_v35 = vld [vmem:[%s1671_s15 + $0x38] sm:$0xff]  ;;  %vm2272_vm6 = vmor %vm1208_vm3, %vm1209_vm4 }
 0x1a3   : > { %v1205_v30 = vsub.f32 1.0, %v1204_v43  ;;  %v1186_v31 = vsel %vm2232_vm1, %v1185_v10, %v1181_v52  ;;  %v2262_v22 = vmul.f32 %v2220_v2, %v1171_v60  ;;  %v1289_v38 = vmul.f32 %v2265_v35, %v2238_v27 }
 0x1a4   : > { %v1220_v0 = vsub.f32 1.0, %v1219_v39  ;;  %1441 = vst.msk [vmem:[%s1929_s23 + $0x40] sm:$0xff] %vm177_vm0, %v1433_v48  ;;  %v2259_v6 = vmul.f32 %v2220_v2, %v1186_v31  ;;  %vm1224_vm5 = vweird.f32 %v1588_v40  ;;  %v1230_v63 = vor.u32 1.1754944e-38, %v1229_v42 }
 0x1a5   : > { %v1206_v16 = vmul.f32 %v1586_v11, %v1205_v30  ;;  %v1431_v34 = vmul.f32 %v2262_v22, %v2109_v61  ;;  %1311 = vrot.lane.b32.xlu1 %v2262_v22, %s1639_s18  ;;  %1297 = vst.msk [vmem:[%s1929_s23 + $0x38] sm:$0xff] %vm177_vm0, %v1289_v38  ;;  %vm1225_vm9 = vmor %vm1223_vm8, %vm1224_vm5  ;;  %vm787_vm5 = vcmask 523520  }
 0x1a6   : > { %v1221_v54 = vmul.f32 %v1588_v40, %v1220_v0  ;;  %1313 = vrot.lane.b32.xlu2 %v2259_v6, %s1639_s18  ;;  %v1432_v8 = vmul.f32 %v2259_v6, %v2118_v57  ;;  %v1288_v59 = vmul.f32 %v2287_v49, %v2259_v6  ;;  %v1287_v57 = vmul.f32 %v2292_v51, %v2262_v22 }
 0x1a7   : > { %v1207_v45 = vadd.f32 %v1586_v11, %v1206_v16  ;;  %1439 = vst.msk [vmem:[%s1929_s23 + $0x10] sm:$0xff] %vm177_vm0, %v1431_v34 }
 0x1a8   : > { %v1222_v61 = vadd.f32 %v1588_v40, %v1221_v54  ;;  %1440 = vst.msk [vmem:[%s1929_s23 + $0x28] sm:$0xff] %vm177_vm0, %v1432_v8 }
 0x1a9   : > { %v1211_v44 = vsel %vm2272_vm6, %v1586_v11, %v1207_v45  ;;  %1296 = vst.msk [vmem:[%s1929_s23 + $0x20] sm:$0xff] %vm177_vm0, %v1288_v59 }
 0x1aa   : > { %v1226_v58 = vsel %vm1225_vm9, %v1588_v40, %v1222_v61  ;;  %v1216_v56 = vsel %vm1213_vm7, %v1215_v55, %v1211_v44  ;;  %1295 = vst.msk [vmem:[%s1929_s23 + $0x8] sm:$0xff] %vm177_vm0, %v1287_v57 }
 0x1ab   : > { %v1231_v3 = vsel %vm1228_vm10, %v1230_v63, %v1226_v58  ;;  %v2307_v15 = vmul.f32 %v2220_v2, %v1216_v56 }
 0x1ac   : > { %v2312_v46 = vmul.f32 %v2220_v2, %v1231_v3 }
 0x1ad   : > { %v1434_v36 = vmul.f32 %v2307_v15, %v2125_v17  ;;  %1317 = vrot.lane.b32.xlu1 %v2307_v15, %s1639_s18  ;;  %v1290_v1 = vmul.f32 %v2328_v21, %v2307_v15  ;;  %v591_v17 = vpop.xlane.xlu0 %590 }
 0x1ae   : > { %1319 = vrot.lane.b32.xlu0 %v2312_v46, %s1639_s18  ;;  %v1435_v12 = vmul.f32 %v2312_v46, %v2134_v4  ;;  %v1291_v14 = vmul.f32 %v2323_v41, %v2312_v46  ;;  %v2347_v20 = vmul.f32 %v591_v17, %v1831_v62 }
 0x1af   : > { %1442 = vst.msk [vmem:[%s1929_s23 + $0x58] sm:$0xff] %vm177_vm0, %v1434_v36 }
 0x1b0   : > { %1443 = vst.msk [vmem:[%s1929_s23 + $0x70] sm:$0xff] %vm177_vm0, %v1435_v12 }
 0x1b1   : > { %1299 = vst.msk [vmem:[%s1929_s23 + $0x68] sm:$0xff] %vm177_vm0, %v1291_v14 }
 0x1b2   : > { %1298 = vst.msk [vmem:[%s1929_s23 + $0x50] sm:$0xff] %vm177_vm0, %v1290_v1 }
 0x1b5   : > { %v2341_v50 = vpop.xlane.xlu0 %599 }
 0x1bd   : > { %v2344_v9 = vpop.xlane.xlu0 %608 }
 0x1dd   : > { %v1143_v4 = vpop.xlane.xlu1 %1142 }
 0x1de   : > { %v1155_v19 = vmul.f32 %v1143_v4, %v1831_v62 }
 0x1e0   : > { %1589 = vrcp.f32 %v1155_v19  ;;  %v1244_v11 = vand.u32 2147483648, %v1155_v19  ;;  %v1242_v10 = vand.u32 2147483647, %v1155_v19  ;;  %vm1238_vm12 = vweird.f32 %v1155_v19 }
 0x1e2   : > { %v1245_v39 = vor.u32 1.1754944e-38, %v1244_v11  ;;  %vm1243_vm14 = vcmp.eq.f32.partialorder %v1242_v10, 8.507059e+37 }
 0x1e4   : > { %v1146_v33 = vpop.xlane.xlu2 %1145 }
 0x1e5   : > { %v1156_v5 = vmul.f32 %v1146_v33, %v1831_v62  ;;  %v588_v37 = vpop.xlane.xlu1 %587 }
 0x1e6   : > { %v1590_v23 = vpop.eup %1589  ;;  %v2350_v26 = vmul.f32 %v588_v37, %v1831_v62 }
 0x1e7   : > { %v1234_v32 = vmul.f32 %v1590_v23, %v1155_v19  ;;  %1591 = vrcp.f32 %v1156_v5  ;;  %vm1239_vm11 = vweird.f32 %v1590_v23  ;;  %v1259_v31 = vand.u32 2147483648, %v1156_v5 }
 0x1e8   : > { %vm1240_vm13 = vmor %vm1238_vm12, %vm1239_vm11  ;;  %1593 = vrcp.f32 %v2347_v20  ;;  %v1257_v16 = vand.u32 2147483647, %v1156_v5  ;;  %vm1253_vm1 = vweird.f32 %v1156_v5  ;;  %vm638_vm11 = vweird.f32 %v2347_v20 }
 0x1e9   : > { %v1235_v29 = vsub.f32 1.0, %v1234_v32  ;;  %1595 = vrcp.f32 %v2350_v26  ;;  %v1260_v34 = vor.u32 1.1754944e-38, %v1259_v31  ;;  %vm623_vm12 = vweird.f32 %v2350_v26 }
 0x1ea   : > { %vm1258_vm3 = vcmp.eq.f32.partialorder %v1257_v16, 8.507059e+37 }
 0x1eb   : > { %v1236_v47 = vmul.f32 %v1590_v23, %v1235_v29  ;;  %v2404_v29 = vmul.f32 %v2341_v50, %v1831_v62 }
 0x1ec   : > { %v594_v40 = vpop.xlane.xlu2 %593 }
 0x1ed   : > { %v1592_v43 = vpop.eup %1591  ;;  %v1237_v7 = vadd.f32 %v1590_v23, %v1236_v47  ;;  %v597_v60 = vpop.xlane.xlu1 %596  ;;  %v2384_v36 = vmul.f32 %v594_v40, %v1831_v62 }
 0x1ee   : > { %v1249_v13 = vmul.f32 %v1592_v43, %v1156_v5  ;;  %vm1254_vm15 = vweird.f32 %v1592_v43  ;;  %v2367_v59 = vpop.eup %1593  ;;  %v2370_v57 = vmul.f32 %v597_v60, %v1831_v62 }
 0x1ef   : > { %v1241_v48 = vsel %vm1240_vm13, %v1590_v23, %v1237_v7  ;;  %vm1255_vm2 = vmor %vm1253_vm1, %vm1254_vm15  ;;  %v2372_v61 = vpop.eup %1595  ;;  %v634_v58 = vmul.f32 %v2367_v59, %v2347_v20  ;;  %vm639_vm9 = vweird.f32 %v2367_v59 }
 0x1f0   : > { %v1250_v52 = vsub.f32 1.0, %v1249_v13  ;;  %v1246_v30 = vsel %vm1243_vm14, %v1245_v39, %v1241_v48  ;;  %v619_v3 = vmul.f32 %v2372_v61, %v2350_v26  ;;  %vm624_vm10 = vweird.f32 %v2372_v61  ;;  %vm2477_vm13 = vmor %vm638_vm11, %vm639_vm9 }
 0x1f1   : > { %v1149_v0 = vpop.xlane.xlu0 %1148  ;;  %v2355_v38 = vmul.f32 %v2220_v2, %v1246_v30  ;;  %v635_v17 = vsub.f32 1.0, %v634_v58  ;;  %vm2487_vm14 = vmor %vm623_vm12, %vm624_vm10  ;;  %vm653_vm11 = vweird.f32 %v2384_v36 }
 0x1f2   : > { %v1251_v42 = vmul.f32 %v1592_v43, %v1250_v52  ;;  %v1157_v55 = vmul.f32 %v1149_v0, %v1831_v62  ;;  %v620_v19 = vsub.f32 1.0, %v619_v3  ;;  %v2427_v52 = vld [vmem:[%s1671_s15 + $0x80] sm:$0xff]  ;;  %v2435_v0 = vld [vmem:[%s1671_s15 + $0x98] sm:$0xff]  ;;  %v629_v3 = vand.u32 2147483648, %v2350_v26 }
 0x1f3   : > { %v1436_v54 = vmul.f32 %v2355_v38, %v2174_v24  ;;  %1321 = vrot.lane.b32.xlu2 %v2355_v38, %s1639_s18  ;;  %v636_v40 = vmul.f32 %v2367_v59, %v635_v17  ;;  %v1292_v30 = vmul.f32 %v2427_v52, %v2355_v38 }
 0x1f4   : > { %v1252_v28 = vadd.f32 %v1592_v43, %v1251_v42  ;;  %1597 = vrcp.f32 %v1157_v55  ;;  %v603_v8 = vpop.xlane.xlu2 %602  ;;  %v1274_v33 = vand.u32 2147483648, %v1157_v55  ;;  %vm1268_vm6 = vweird.f32 %v1157_v55 }
 0x1f5   : > { %1444 = vst.msk [vmem:[%s1929_s23 + $0x88] sm:$0xff] %vm177_vm0, %v1436_v54  ;;  %v2365_v45 = vmul.f32 %v603_v8, %v1831_v62  ;;  %v606_v1 = vpop.xlane.xlu1 %605  ;;  %v621_v39 = vmul.f32 %v2372_v61, %v620_v19  ;;  %v637_v8 = vadd.f32 %v2367_v59, %v636_v40 }
 0x1f6   : > { %v1256_v24 = vsel %vm1255_vm2, %v1592_v43, %v1252_v28  ;;  %v2396_v5 = vmul.f32 %v606_v1, %v1831_v62  ;;  %v1275_v7 = vor.u32 1.1754944e-38, %v1274_v33  ;;  %1300 = vst.msk [vmem:[%s1929_s23 + $0x80] sm:$0xff] %vm177_vm0, %v1292_v30  ;;  %v672_v30 = vand.u32 2147483647, %v2370_v57 }
 0x1f7   : > { %v1261_v63 = vsel %vm1258_vm3, %v1260_v34, %v1256_v24  ;;  %1599 = vrcp.f32 %v2365_v45  ;;  %v622_v28 = vadd.f32 %v2372_v61, %v621_v39  ;;  %v674_v39 = vand.u32 2147483648, %v2370_v57 }
 0x1f8   : > { %v2375_v44 = vmul.f32 %v2220_v2, %v1261_v63  ;;  %1601 = vrcp.f32 %v2370_v57  ;;  %v2458_v63 = vld [vmem:[%s1671_s15 + $0xb0] sm:$0xff]  ;;  %vm698_vm3 = vweird.f32 %v2365_v45  ;;  %vm673_vm10 = vcmp.eq.f32.partialorder %v672_v30, 8.507059e+37 }
 0x1f9   : > { %1603 = vrcp.f32 %v2384_v36  ;;  %v626_v33 = vsel %vm2487_vm14, %v2372_v61, %v622_v28  ;;  %v704_v61 = vand.u32 2147483648, %v2365_v45 }
 0x1fa   : > { %v1598_v56 = vpop.eup %1597  ;;  %1323 = vrot.lane.b32.xlu1 %v2375_v44, %s1639_s18  ;;  %v1437_v12 = vmul.f32 %v2375_v44, %v2182_v53  ;;  %v1272_v53 = vand.u32 2147483647, %v1157_v55  ;;  %1605 = vrcp.f32 %v2396_v5  ;;  %v1293_v42 = vmul.f32 %v2435_v0, %v2375_v44 }
 0x1fb   : > { %v1264_v14 = vmul.f32 %v1598_v56, %v1157_v55  ;;  %1351 = vrot.lane.b32.xlu2 %v2262_v22, %s1637_s17  ;;  %vm1269_vm4 = vweird.f32 %v1598_v56  ;;  %1607 = vrcp.f32 %v2404_v29  ;;  %v644_v55 = vand.u32 2147483648, %v2347_v20 }
 0x1fc   : > { %1445 = vst.msk [vmem:[%s1929_s23 + $0xa0] sm:$0xff] %vm177_vm0, %v1437_v12  ;;  %vm2408_vm7 = vmor %vm1268_vm6, %vm1269_vm4  ;;  %vm1273_vm8 = vcmp.eq.f32.partialorder %v1272_v53, 8.507059e+37  ;;  %v642_v12 = vand.u32 2147483647, %v2347_v20  ;;  %v630_v53 = vor.u32 1.1754944e-38, %v629_v3  ;;  %vm668_vm4 = vweird.f32 %v2370_v57 }
 0x1fd   : > { %v1265_v4 = vsub.f32 1.0, %v1264_v14  ;;  %v2398_v23 = vpop.eup %1599  ;;  %1301 = vst.msk [vmem:[%s1929_s23 + $0x98] sm:$0xff] %vm177_vm0, %v1293_v42  ;;  %v2469_v14 = vmul.f32 %v2344_v9, %v1831_v62  ;;  %v641_v9 = vsel %vm2477_vm13, %v2367_v59, %v637_v8  ;;  %v645_v20 = vor.u32 1.1754944e-38, %v644_v55 }
 0x1fe   : > { %v2400_v37 = vpop.eup %1601  ;;  %v694_v50 = vmul.f32 %v2398_v23, %v2365_v45  ;;  %v2506_v59 = vperm.slane %v2217_v18, 1  ;;  %vm643_vm15 = vcmp.eq.f32.partialorder %v642_v12, 8.507059e+37  ;;  %vm699_vm1 = vweird.f32 %v2398_v23 }
 0x1ff   : > { %v1266_v32 = vmul.f32 %v1598_v56, %v1265_v4  ;;  %v664_v13 = vmul.f32 %v2400_v37, %v2370_v57  ;;  %v2431_v31 = vpop.eup %1603  ;;  %1609 = vrcp.f32 %v2469_v14  ;;  %vm669_vm2 = vweird.f32 %v2400_v37  ;;  %vm2530_vm6 = vmor %vm698_vm3, %vm699_vm1 }
 0x200   : > { %v1314_v11 = vpop.permute.xlu2 %1313  ;;  %v695_v54 = vsub.f32 1.0, %v694_v50  ;;  %vm683_vm3 = vweird.f32 %v2404_v29 }
 0x201   : > { %v1267_v47 = vadd.f32 %v1598_v56, %v1266_v32  ;;  %v1336_v10 = vmul.f32 %v2287_v49, %v1314_v11  ;;  %v665_v34 = vsub.f32 1.0, %v664_v13  ;;  %v702_v13 = vand.u32 2147483647, %v2365_v45 }
 0x202   : > { %1353 = vrot.lane.b32.xlu1 %v2259_v6, %s1637_s17 }
 0x203   : > { %1344 = vst.msk [vmem:[%s1929_s23 + $0x20] sm:$0xff] %vm787_vm5, %v1336_v10  ;;  %1357 = vrot.lane.b32.xlu2 %v2307_v15, %s1637_s17  ;;  %v1271_v48 = vsel %vm2408_vm7, %v1598_v56, %v1267_v47  ;;  %v2462_v56 = vpop.eup %1605  ;;  %v666_v32 = vmul.f32 %v2400_v37, %v665_v34  ;;  %v646_v47 = vsel %vm643_vm15, %v645_v20, %v641_v9  ;;  %vm2536_vm7 = vmor %vm668_vm4, %vm669_vm2  ;;  %vm703_vm9 = vcmp.eq.f32.partialorder %v702_v13, 8.507059e+37 }
 0x204   : > { %v1276_v60 = vsel %vm1273_vm8, %v1275_v7, %v1271_v48  ;;  %v2481_v17 = vpop.eup %1607  ;;  %v709_v19 = vmul.f32 %v2462_v56, %v2396_v5  ;;  %v2520_v50 = vmul.f32 %v2506_v59, %v646_v47  ;;  %vm654_vm8 = vweird.f32 %v2431_v31 }
 0x205   : > { %v2440_v16 = vmul.f32 %v2220_v2, %v1276_v60  ;;  %v649_v2 = vmul.f32 %v2431_v31, %v2384_v36  ;;  %v679_v11 = vmul.f32 %v2481_v17, %v2404_v29  ;;  %v667_v18 = vadd.f32 %v2400_v37, %v666_v32  ;;  %v2543_v28 = vpop.eup %1609  ;;  %vm2557_vm12 = vmor %vm653_vm11, %vm654_vm8 }
 0x206   : > { %v710_v43 = vsub.f32 1.0, %v709_v19  ;;  %v724_v62 = vmul.f32 %v2543_v28, %v2469_v14  ;;  %vm714_vm13 = vweird.f32 %v2462_v56  ;;  %v719_v19 = vand.u32 2147483648, %v2396_v5 }
 0x207   : > { %1325 = vrot.lane.b32.xlu0 %v2440_v16, %s1639_s18  ;;  %v1438_v24 = vmul.f32 %v2440_v16, %v2188_v25  ;;  %v1294_v58 = vmul.f32 %v2458_v63, %v2440_v16  ;;  %v627_v25 = vand.u32 2147483647, %v2350_v26  ;;  %v696_v26 = vmul.f32 %v2398_v23, %v695_v54 }
 0x208   : > { %v650_v4 = vsub.f32 1.0, %v649_v2  ;;  %v680_v42 = vsub.f32 1.0, %v679_v11  ;;  %v705_v54 = vor.u32 1.1754944e-38, %v704_v61  ;;  %v671_v57 = vsel %vm2536_vm7, %v2400_v37, %v667_v18 }
 0x209   : > { %1446 = vst.msk [vmem:[%s1929_s23 + $0xb8] sm:$0xff] %vm177_vm0, %v1438_v24  ;;  %v697_v40 = vadd.f32 %v2398_v23, %v696_v26  ;;  %v711_v34 = vmul.f32 %v2462_v56, %v710_v43  ;;  %v675_v24 = vor.u32 1.1754944e-38, %v674_v39  ;;  %vm713_vm15 = vweird.f32 %v2396_v5 }
 0x20a   : > { %1359 = vrot.lane.b32.xlu1 %v2312_v46, %s1637_s17  ;;  %1302 = vst.msk [vmem:[%s1929_s23 + $0xb0] sm:$0xff] %vm177_vm0, %v1294_v58  ;;  %vm628_vm0 = vcmp.eq.f32.partialorder %v627_v25, 8.507059e+37  ;;  %v651_v7 = vmul.f32 %v2431_v31, %v650_v4  ;;  %v659_v58 = vand.u32 2147483648, %v2384_v36  ;;  %v681_v1 = vmul.f32 %v2481_v17, %v680_v42 }
 0x20b   : > { %1363 = vrot.lane.b32.xlu2 %v2375_v44, %s1637_s17  ;;  %v631_v10 = vsel %vm628_vm0, %v630_v53, %v626_v33  ;;  %v701_v45 = vsel %vm2530_vm6, %v2398_v23, %v697_v40  ;;  %v657_v23 = vand.u32 2147483647, %v2384_v36  ;;  %v676_v37 = vsel %vm673_vm10, %v675_v24, %v671_v57  ;;  %vm715_vm0 = vmor %vm713_vm15, %vm714_vm13 }
 0x20c   : > { %v2526_v48 = vmul.f32 %v2506_v59, %v631_v10  ;;  %v652_v8 = vadd.f32 %v2431_v31, %v651_v7  ;;  %v706_v12 = vsel %vm703_vm9, %v705_v54, %v701_v45  ;;  %v712_v36 = vadd.f32 %v2462_v56, %v711_v34 }
 0x20d   : > { %v2574_v26 = vmul.f32 %v2506_v59, %v706_v12  ;;  %vm658_vm14 = vcmp.eq.f32.partialorder %v657_v23, 8.507059e+37  ;;  %v660_v4 = vor.u32 1.1754944e-38, %v659_v58  ;;  %v2579_v32 = vmul.f32 %v2506_v59, %v676_v37  ;;  %v2682_v37 = vld [vmem:[%s1671_s15 + $0x48] sm:$0xff] }
 0x20e   : > { %v656_v9 = vsel %vm2557_vm12, %v2431_v31, %v652_v8  ;;  %v717_v31 = vand.u32 2147483647, %v2396_v5  ;;  %v725_v11 = vsub.f32 1.0, %v724_v62  ;;  %v716_v47 = vsel %vm715_vm0, %v2462_v56, %v712_v36 }
 0x20f   : > { %1355 = vrot.lane.b32.xlu0 %v2238_v27, %s1637_s17  ;;  %v661_v53 = vsel %vm658_vm14, %v660_v4, %v656_v9  ;;  %v682_v10 = vadd.f32 %v2481_v17, %v681_v1  ;;  %vm684_vm1 = vweird.f32 %v2481_v17  ;;  %v720_v40 = vor.u32 1.1754944e-38, %v719_v19 }
 0x210   : > { %v689_v5 = vand.u32 2147483648, %v2404_v29  ;;  %v741_v61 = vmul.f32 %v2506_v59, %v661_v53  ;;  %vm718_vm2 = vcmp.eq.f32.partialorder %v717_v31, 8.507059e+37  ;;  %v687_v43 = vand.u32 2147483647, %v2404_v29  ;;  %vm685_vm4 = vmor %vm683_vm3, %vm684_vm1  ;;  %v1623_v31 = vld [vmem:[%s1671_s15 + $0x18] sm:$0xff] }
 0x211   : > { %v721_v18 = vsel %vm718_vm2, %v720_v40, %v716_v47  ;;  %v686_v56 = vsel %vm685_vm4, %v2481_v17, %v682_v10  ;;  %v726_v7 = vmul.f32 %v2543_v28, %v725_v11  ;;  %vm729_vm7 = vweird.f32 %v2543_v28 }
 0x212   : > { %757 = vrot.lane.b32.xlu1 %v2520_v50, %s1639_s18  ;;  %v690_v30 = vor.u32 1.1754944e-38, %v689_v5  ;;  %v745_v55 = vmul.f32 %v2506_v59, %v721_v18  ;;  %vm688_vm6 = vcmp.eq.f32.partialorder %v687_v43, 8.507059e+37  ;;  %v734_v45 = vand.u32 2147483648, %v2469_v14  ;;  %v1624_v5 = vld [vmem:[%s1671_s15 + $0x78] sm:$0xff] }
 0x213   : > { %755 = vrot.lane.b32.xlu2 %v2526_v48, %s1639_s18  ;;  %v727_v17 = vadd.f32 %v2543_v28, %v726_v7  ;;  %vm728_vm8 = vweird.f32 %v2469_v14  ;;  %v732_v57 = vand.u32 2147483647, %v2469_v14  ;;  %vm828_vm11 = vcmask 785920  }
 0x214   : > { %v1316_v2 = vpop.permute.xlu0 %1315  ;;  %v691_v29 = vsel %vm688_vm6, %v690_v30, %v686_v56  ;;  %vm730_vm9 = vmor %vm728_vm8, %vm729_vm7  ;;  %v735_v34 = vor.u32 1.1754944e-38, %v734_v45  ;;  %v1625_v56 = vld [vmem:[%s1671_s15 + $0x30] sm:$0xff]  ;;  %vm869_vm12 = vcmask 1048320  }
 0x215   : > { %v1337_v3 = vmul.f32 %v2265_v35, %v1316_v2  ;;  %v743_v54 = vmul.f32 %v2506_v59, %v691_v29  ;;  %v731_v8 = vsel %vm730_vm9, %v2543_v28, %v727_v17  ;;  %vm733_vm10 = vcmp.eq.f32.partialorder %v732_v57, 8.507059e+37 }
 0x216   : > { %v736_v2 = vsel %vm733_vm10, %v735_v34, %v731_v8  ;;  %v1627_v8 = vld [vmem:[%s1671_s15 + $0xa8] sm:$0xff] }
 0x217   : > { %1345 = vst.msk [vmem:[%s1929_s23 + $0x38] sm:$0xff] %vm787_vm5, %v1337_v3  ;;  %1361 = vrot.lane.b32.xlu0 %v2355_v38, %s1637_s17  ;;  %v1312_v20 = vpop.permute.xlu1 %1311  ;;  %v746_v24 = vmul.f32 %v2506_v59, %v736_v2  ;;  %v2669_v3 = vld [vmem:[%s1671_s15] sm:$0xff] }
 0x218   : > { %v1335_v33 = vmul.f32 %v2292_v51, %v1312_v20  ;;  %v2694_v20 = vld [vmem:[%s1671_s15 + $0x90] sm:$0xff] }
 0x21a   : > { %765 = vrot.lane.b32.xlu1 %v2574_v26, %s1639_s18  ;;  %1343 = vst.msk [vmem:[%s1929_s23 + $0x8] sm:$0xff] %vm787_vm5, %v1335_v33 }
 0x21b   : > { %761 = vrot.lane.b32.xlu2 %v2579_v32, %s1639_s18 }
 0x21f   : > { %759 = vrot.lane.b32.xlu0 %v741_v61, %s1639_s18  ;;  %v1318_v13 = vpop.permute.xlu1 %1317 }
 0x220   : > { %v1320_v39 = vpop.permute.xlu0 %1319  ;;  %v1338_v42 = vmul.f32 %v2328_v21, %v1318_v13 }
 0x221   : > { %v1339_v60 = vmul.f32 %v2323_v41, %v1320_v39 }
 0x222   : > { %796 = vrot.lane.b32.xlu1 %v2526_v48, %s1637_s17  ;;  %1346 = vst.msk [vmem:[%s1929_s23 + $0x50] sm:$0xff] %vm787_vm5, %v1338_v42  ;;  %v1626_v42 = vld [vmem:[%s1671_s15 + $0x60] sm:$0xff] }
 0x223   : > { %1347 = vst.msk [vmem:[%s1929_s23 + $0x68] sm:$0xff] %vm787_vm5, %v1339_v60  ;;  %767 = vrot.lane.b32.xlu2 %v745_v55, %s1639_s18 }
 0x227   : > { %763 = vrot.lane.b32.xlu0 %v743_v54, %s1639_s18 }
 0x22a   : > { %802 = vrot.lane.b32.xlu1 %v2579_v32, %s1637_s17 }
 0x22b   : > { %798 = vrot.lane.b32.xlu2 %v2520_v50, %s1637_s17 }
 0x22f   : > { %769 = vrot.lane.b32.xlu0 %v746_v24, %s1639_s18 }
 0x232   : > { %808 = vrot.lane.b32.xlu1 %v745_v55, %s1637_s17 }
 0x233   : > { %804 = vrot.lane.b32.xlu2 %v743_v54, %s1637_s17 }
 0x237   : > { %800 = vrot.lane.b32.xlu0 %v741_v61, %s1637_s17 }
 0x23a   : > { %839 = vrot.lane.b32.xlu1 %v2520_v50, %s1636_s16 }
 0x23b   : > { %810 = vrot.lane.b32.xlu2 %v746_v24, %s1637_s17 }
 0x23f   : > { %806 = vrot.lane.b32.xlu0 %v2574_v26, %s1637_s17 }
 0x242   : > { %845 = vrot.lane.b32.xlu1 %v743_v54, %s1636_s16 }
 0x243   : > { %841 = vrot.lane.b32.xlu2 %v741_v61, %s1636_s16 }
 0x247   : > { %837 = vrot.lane.b32.xlu0 %v2526_v48, %s1636_s16 }
 0x24a   : > { %851 = vrot.lane.b32.xlu1 %v746_v24, %s1636_s16 }
 0x24b   : > { %847 = vrot.lane.b32.xlu2 %v2574_v26, %s1636_s16 }
 0x24d   : > { %v1322_v14 = vpop.permute.xlu2 %1321 }
 0x24e   : > { %v1340_v59 = vmul.f32 %v2427_v52, %v1322_v14 }
 0x24f   : > { %843 = vrot.lane.b32.xlu0 %v2579_v32, %s1636_s16 }
 0x250   : > { %1348 = vst.msk [vmem:[%s1929_s23 + $0x80] sm:$0xff] %vm787_vm5, %v1340_v59 }
 0x252   : > { %1365 = vrot.lane.b32.xlu1 %v2440_v16, %s1637_s17 }
 0x253   : > { %1393 = vrot.lane.b32.xlu2 %v2259_v6, %s1636_s16 }
 0x255   : > { %v1352_v50 = vpop.permute.xlu2 %1351 }
 0x256   : > { %v1375_v48 = vmul.f32 %v2292_v51, %v1352_v50 }
 0x257   : > { %849 = vrot.lane.b32.xlu0 %v745_v55, %s1636_s16 }
 0x258   : > { %1383 = vst.msk [vmem:[%s1929_s23 + $0x8] sm:$0xff] %vm828_vm11, %v1375_v48 }
 0x25a   : > { %1395 = vrot.lane.b32.xlu1 %v2238_v27, %s1636_s16 }
 0x25b   : > { %1399 = vrot.lane.b32.xlu2 %v2312_v46, %s1636_s16 }
 0x25d   : > { %v1358_v28 = vpop.permute.xlu2 %1357 }
 0x25e   : > { %v1378_v6 = vmul.f32 %v2328_v21, %v1358_v28 }
 0x25f   : > { %1391 = vrot.lane.b32.xlu0 %v2262_v22, %s1636_s16 }
 0x260   : > { %1386 = vst.msk [vmem:[%s1929_s23 + $0x50] sm:$0xff] %vm828_vm11, %v1378_v6 }
 0x262   : > { %1401 = vrot.lane.b32.xlu1 %v2355_v38, %s1636_s16 }
 0x263   : > { %1405 = vrot.lane.b32.xlu2 %v2440_v16, %s1636_s16 }
 0x265   : > { %v1364_v27 = vpop.permute.xlu2 %1363 }
 0x266   : > { %v1381_v22 = vmul.f32 %v2435_v0, %v1364_v27 }
 0x267   : > { %1397 = vrot.lane.b32.xlu0 %v2307_v15, %s1636_s16 }
 0x26c   : > { %v1324_v46 = vpop.permute.xlu1 %1323 }
 0x26d   : > { %v1341_v23 = vmul.f32 %v2435_v0, %v1324_v46  ;;  %v756_v58 = vpop.permute.xlu2 %755 }
 0x26e   : > { %v779_v38 = vmul.f32 %v2669_v3, %v756_v58 }
 0x26f   : > { %1349 = vst.msk [vmem:[%s1929_s23 + $0x98] sm:$0xff] %vm787_vm5, %v1341_v23  ;;  %1403 = vrot.lane.b32.xlu0 %v2375_v44, %s1636_s16 }
 0x270   : > { %1389 = vst.msk [vmem:[%s1929_s23 + $0x98] sm:$0xff] %vm828_vm11, %v1381_v22 }
 0x271   : > { %788 = vst.msk [vmem:[%s1929_s23] sm:$0xff] %vm787_vm5, %v779_v38 }
 0x274   : > { %v1354_v15 = vpop.permute.xlu1 %1353 }
 0x275   : > { %v1376_v16 = vmul.f32 %v2287_v49, %v1354_v15  ;;  %v762_v12 = vpop.permute.xlu2 %761 }
 0x276   : > { %v782_v25 = vmul.f32 %v2682_v37, %v762_v12 }
 0x277   : > { %1384 = vst.msk [vmem:[%s1929_s23 + $0x20] sm:$0xff] %vm828_vm11, %v1376_v16 }
 0x278   : > { %791 = vst.msk [vmem:[%s1929_s23 + $0x48] sm:$0xff] %vm787_vm5, %v782_v25 }
 0x279   : > { %v1326_v44 = vpop.permute.xlu0 %1325 }
 0x27a   : > { %v1342_v1 = vmul.f32 %v2458_v63, %v1326_v44 }
 0x27c   : > { %1350 = vst.msk [vmem:[%s1929_s23 + $0xb0] sm:$0xff] %vm787_vm5, %v1342_v1  ;;  %v1360_v62 = vpop.permute.xlu1 %1359 }
 0x27d   : > { %v768_v9 = vpop.permute.xlu2 %767  ;;  %v1379_v36 = vmul.f32 %v2323_v41, %v1360_v62 }
 0x27e   : > { %v785_v26 = vmul.f32 %v2694_v20, %v768_v9 }
 0x27f   : > { %1387 = vst.msk [vmem:[%s1929_s23 + $0x68] sm:$0xff] %vm828_vm11, %v1379_v36 }
 0x280   : > { %794 = vst.msk [vmem:[%s1929_s23 + $0x90] sm:$0xff] %vm787_vm5, %v785_v26 }
 0x281   : > { %v1356_v4 = vpop.permute.xlu0 %1355 }
 0x282   : > { %v1377_v19 = vmul.f32 %v2265_v35, %v1356_v4 }
 0x284   : > { %1385 = vst.msk [vmem:[%s1929_s23 + $0x38] sm:$0xff] %vm828_vm11, %v1377_v19  ;;  %v758_v33 = vpop.permute.xlu1 %757 }
 0x285   : > { %v799_v32 = vpop.permute.xlu2 %798  ;;  %v780_v53 = vmul.f32 %v1623_v31, %v758_v33 }
 0x286   : > { %v821_v11 = vmul.f32 %v1623_v31, %v799_v32 }
 0x287   : > { %789 = vst.msk [vmem:[%s1929_s23 + $0x18] sm:$0xff] %vm787_vm5, %v780_v53 }
 0x288   : > { %830 = vst.msk [vmem:[%s1929_s23 + $0x18] sm:$0xff] %vm828_vm11, %v821_v11 }
 0x289   : > { %v1362_v47 = vpop.permute.xlu0 %1361 }
 0x28a   : > { %v1380_v10 = vmul.f32 %v2427_v52, %v1362_v47 }
 0x28c   : > { %1388 = vst.msk [vmem:[%s1929_s23 + $0x80] sm:$0xff] %vm828_vm11, %v1380_v10  ;;  %v766_v40 = vpop.permute.xlu1 %765 }
 0x28d   : > { %v784_v61 = vmul.f32 %v1624_v5, %v766_v40  ;;  %v805_v43 = vpop.permute.xlu2 %804 }
 0x28e   : > { %v824_v29 = vmul.f32 %v1626_v42, %v805_v43 }
 0x28f   : > { %793 = vst.msk [vmem:[%s1929_s23 + $0x78] sm:$0xff] %vm787_vm5, %v784_v61 }
 0x291   : > { %v760_v18 = vpop.permute.xlu0 %759 }
 0x292   : > { %v781_v7 = vmul.f32 %v1625_v56, %v760_v18 }
 0x294   : > { %790 = vst.msk [vmem:[%s1929_s23 + $0x30] sm:$0xff] %vm787_vm5, %v781_v7  ;;  %v797_v39 = vpop.permute.xlu1 %796 }
 0x295   : > { %v820_v13 = vmul.f32 %v2669_v3, %v797_v39  ;;  %v811_v30 = vpop.permute.xlu2 %810 }
 0x296   : > { %v827_v2 = vmul.f32 %v1627_v8, %v811_v30 }
 0x297   : > { %829 = vst.msk [vmem:[%s1929_s23] sm:$0xff] %vm828_vm11, %v820_v13 }
 0x299   : > { %v764_v60 = vpop.permute.xlu0 %763 }
 0x29a   : > { %v783_v55 = vmul.f32 %v1626_v42, %v764_v60 }
 0x29c   : > { %792 = vst.msk [vmem:[%s1929_s23 + $0x60] sm:$0xff] %vm787_vm5, %v783_v55  ;;  %v803_v17 = vpop.permute.xlu1 %802 }
 0x29d   : > { %833 = vst.msk [vmem:[%s1929_s23 + $0x60] sm:$0xff] %vm828_vm11, %v824_v29  ;;  %v823_v45 = vmul.f32 %v2682_v37, %v803_v17  ;;  %v842_v54 = vpop.permute.xlu2 %841 }
 0x29e   : > { %v863_v28 = vmul.f32 %v1625_v56, %v842_v54 }
 0x29f   : > { %832 = vst.msk [vmem:[%s1929_s23 + $0x48] sm:$0xff] %vm828_vm11, %v823_v45 }
 0x2a1   : > { %v770_v57 = vpop.permute.xlu0 %769 }
 0x2a2   : > { %v786_v34 = vmul.f32 %v1627_v8, %v770_v57 }
 0x2a4   : > { %795 = vst.msk [vmem:[%s1929_s23 + $0xa8] sm:$0xff] %vm787_vm5, %v786_v34  ;;  %v809_v24 = vpop.permute.xlu1 %808 }
 0x2a5   : > { %836 = vst.msk [vmem:[%s1929_s23 + $0xa8] sm:$0xff] %vm828_vm11, %v827_v2  ;;  %v826_v14 = vmul.f32 %v2694_v20, %v809_v24  ;;  %v848_v59 = vpop.permute.xlu2 %847 }
 0x2a6   : > { %v866_v38 = vmul.f32 %v1624_v5, %v848_v59 }
 0x2a7   : > { %835 = vst.msk [vmem:[%s1929_s23 + $0x90] sm:$0xff] %vm828_vm11, %v826_v14 }
 0x2a9   : > { %v801_v50 = vpop.permute.xlu0 %800 }
 0x2aa   : > { %v822_v48 = vmul.f32 %v1625_v56, %v801_v50 }
 0x2ac   : > { %831 = vst.msk [vmem:[%s1929_s23 + $0x30] sm:$0xff] %vm828_vm11, %v822_v48  ;;  %v840_v6 = vpop.permute.xlu1 %839 }
 0x2ad   : > { %872 = vst.msk [vmem:[%s1929_s23 + $0x30] sm:$0xff] %vm869_vm12, %v863_v28  ;;  %v862_v27 = vmul.f32 %v1623_v31, %v840_v6  ;;  %v1394_v46 = vpop.permute.xlu2 %1393 }
 0x2ae   : > { %v1416_v23 = vmul.f32 %v2287_v49, %v1394_v46 }
 0x2af   : > { %871 = vst.msk [vmem:[%s1929_s23 + $0x18] sm:$0xff] %vm869_vm12, %v862_v27 }
 0x2b0   : > { %1424 = vst.msk [vmem:[%s1929_s23 + $0x20] sm:$0xff] %vm869_vm12, %v1416_v23 }
 0x2b1   : > { %v807_v58 = vpop.permute.xlu0 %806 }
 0x2b2   : > { %v825_v22 = vmul.f32 %v1624_v5, %v807_v58 }
 0x2b4   : > { %834 = vst.msk [vmem:[%s1929_s23 + $0x78] sm:$0xff] %vm828_vm11, %v825_v22  ;;  %v846_v15 = vpop.permute.xlu1 %845 }
 0x2b5   : > { %875 = vst.msk [vmem:[%s1929_s23 + $0x78] sm:$0xff] %vm869_vm12, %v866_v38  ;;  %v865_v16 = vmul.f32 %v1626_v42, %v846_v15  ;;  %v1400_v12 = vpop.permute.xlu2 %1399 }
 0x2b6   : > { %v1419_v25 = vmul.f32 %v2323_v41, %v1400_v12 }
 0x2b7   : > { %874 = vst.msk [vmem:[%s1929_s23 + $0x60] sm:$0xff] %vm869_vm12, %v865_v16 }
 0x2b8   : > { %1427 = vst.msk [vmem:[%s1929_s23 + $0x68] sm:$0xff] %vm869_vm12, %v1419_v25 }
 0x2b9   : > { %v838_v49 = vpop.permute.xlu0 %837 }
 0x2ba   : > { %v861_v44 = vmul.f32 %v2669_v3, %v838_v49 }
 0x2bc   : > { %870 = vst.msk [vmem:[%s1929_s23] sm:$0xff] %vm869_vm12, %v861_v44  ;;  %v852_v1 = vpop.permute.xlu1 %851 }
 0x2bd   : > { %v868_v62 = vmul.f32 %v1627_v8, %v852_v1  ;;  %v1406_v36 = vpop.permute.xlu2 %1405 }
 0x2be   : > { %v1422_v3 = vmul.f32 %v2458_v63, %v1406_v36 }
 0x2bf   : > { %877 = vst.msk [vmem:[%s1929_s23 + $0xa8] sm:$0xff] %vm869_vm12, %v868_v62 }
 0x2c1   : > { %v844_v9 = vpop.permute.xlu0 %843 }
 0x2c2   : > { %v864_v41 = vmul.f32 %v2682_v37, %v844_v9 }
 0x2c4   : > { %873 = vst.msk [vmem:[%s1929_s23 + $0x48] sm:$0xff] %vm869_vm12, %v864_v41  ;;  %v1366_v26 = vpop.permute.xlu1 %1365 }
 0x2c5   : > { %v1382_v4 = vmul.f32 %v2458_v63, %v1366_v26 }
 0x2c7   : > { %1390 = vst.msk [vmem:[%s1929_s23 + $0xb0] sm:$0xff] %vm828_vm11, %v1382_v4 }
 0x2c8   : > { %1430 = vst.msk [vmem:[%s1929_s23 + $0xb0] sm:$0xff] %vm869_vm12, %v1422_v3 }
 0x2c9   : > { %v850_v19 = vpop.permute.xlu0 %849 }
 0x2ca   : > { %v867_v33 = vmul.f32 %v2694_v20, %v850_v19 }
 0x2cc   : > { %876 = vst.msk [vmem:[%s1929_s23 + $0x90] sm:$0xff] %vm869_vm12, %v867_v33  ;;  %v1396_v37 = vpop.permute.xlu1 %1395 }
 0x2cd   : > { %v1417_v32 = vmul.f32 %v2265_v35, %v1396_v37 }
 0x2cf   : > { %1425 = vst.msk [vmem:[%s1929_s23 + $0x38] sm:$0xff] %vm869_vm12, %v1417_v32 }
 0x2d1   : > { %v1392_v31 = vpop.permute.xlu0 %1391 }
 0x2d2   : > { %v1415_v53 = vmul.f32 %v2292_v51, %v1392_v31 }
 0x2d4   : > { %1423 = vst.msk [vmem:[%s1929_s23 + $0x8] sm:$0xff] %vm869_vm12, %v1415_v53  ;;  %v1402_v63 = vpop.permute.xlu1 %1401 }
 0x2d5   : > { %v1420_v11 = vmul.f32 %v2427_v52, %v1402_v63 }
 0x2d7   : > { %1428 = vst.msk [vmem:[%s1929_s23 + $0x80] sm:$0xff] %vm869_vm12, %v1420_v11 }
 0x2d9   : > { %v1398_v47 = vpop.permute.xlu0 %1397 }
 0x2da   : > { %v1418_v20 = vmul.f32 %v2328_v21, %v1398_v47 }
 0x2dc   : > { %1426 = vst.msk [vmem:[%s1929_s23 + $0x50] sm:$0xff] %vm869_vm12, %v1418_v20 }
 0x2e1   : > { %v1404_v10 = vpop.permute.xlu0 %1403 }
 0x2e2   : > { %v1421_v35 = vmul.f32 %v2435_v0, %v1404_v10 }
 0x2e4   : > { %1429 = vst.msk [vmem:[%s1929_s23 + $0x98] sm:$0xff] %vm869_vm12, %v1421_v35 }
 0x2e5 PF: > { %s12_s9 = sadd.s32 1, %s1634_s9  }
 0x2e6   : > { %p9_p4 = scmp.ge.s32.totalorder %s12_s9, 6  }
 0x2e8   :  { %11 = sbr.rel (!%p9_p4) target bundleno = 1 (0x1), region = 58 }

</bundles_post_ra>
